<compile_context>
chip_gen: v6e
topology: v6e:2x2x1
jax: 0.10.0
libtpu: 0.0.40
codegen_flags: <defaults>
</compile_context>

<pallas_src>
import jax
import jax.numpy as jnp
from jax.experimental import pallas as pl
from jax.experimental.pallas import tpu as pltpu

LEAKY_SLOPE = 0.01  # nn.LeakyReLU() default negative_slope
HID = 128           # lane-padded hidden width (all real hidden dims <= 128)


def _round_up(x, m):
    return ((x + m - 1) // m) * m


def _leaky_relu(x):
    # slope in (0,1): max(x, slope*x) == leaky_relu(x); 2 VALU ops, no select.
    return jnp.maximum(x, LEAKY_SLOPE * x)


def _pick_batch_tile(B):
    """Multiple of 16 (bf16 sublanes). One step up to 1024 rows; for large B
    prefer 512-1024 row tiles with an even >=4 step count (v7x megacore)."""
    B16 = _round_up(B, 16)
    if B16 <= 1024:
        return B16
    for tile in (1024, 512):
        steps = -(-B16 // tile)
        if steps >= 4 and steps % 2 == 0:
            return tile
    steps = max(4, _round_up(-(-B16 // 1024), 2))
    return _round_up(-(-B16 // steps), 16)


def _mlp_kernel(x_ref, w1_ref, wmid_ref, w_last_ref, bmid_ref, b_last_ref, o_ref):
    """Whole 'deep' MLP hot path for one batch tile, fused in VMEM.

    Sequence (eval mode, dropout = identity):
      Linear -> LeakyReLU -> [Dropout] ->
      Linear -> LeakyReLU -> [Dropout] ->
      Linear -> LeakyReLU -> [Dropout] ->
      Linear -> LeakyReLU ->
      Linear
    """
    n_mid = wmid_ref.shape[0]

    # Layer 1: bf16 x (unpadded 32 lanes) @ bf16 w1 [32,128], f32 accumulation.
    h = jnp.dot(x_ref[...], w1_ref[...], preferred_element_type=jnp.float32)
    h = _leaky_relu(h + bmid_ref[0])
    # TODO(synk): nn.Dropout(p) omitted -- identity in eval mode; training-mode
    # stochastic masking would use pltpu.prng_seed / pltpu.prng_random_bits.

    # Middle layers: [tile,128] @ [128,128].
    for k in range(n_mid):
        h = jnp.dot(h.astype(jnp.bfloat16), wmid_ref[k],
                    preferred_element_type=jnp.float32)
        h = _leaky_relu(h + bmid_ref[k + 1])

    # Output layer: [tile,128] @ [128,8], no activation, real (narrow) output.
    y = jnp.dot(h.astype(jnp.bfloat16), w_last_ref[...],
                preferred_element_type=jnp.float32) + b_last_ref[...]
    o_ref[...] = y.astype(o_ref.dtype)


def prepare_params(params):
    """Pad / cast / pack the Linear params ONCE (outside the hot path).

    params: list of (W [in, out], b [1, out]) f32, length >= 2
            (W is PyTorch weight.T so the forward computes x @ W + b).
    Returns (w1, wmid, w_last, bmid, b_last):
      w1     [n_input, HID]       bf16   (output cols zero-padded)
      wmid   [L-2, HID, HID]      bf16   (both dims zero-padded)
      w_last [HID, n_output]      bf16   (input rows zero-padded)
      bmid   [L-1, 1, HID]        f32    (zero-padded)
      b_last [1, n_output]        f32
    """
    n_layers = len(params)
    assert n_layers >= 2
    n_input = params[0][0].shape[0]
    n_output = params[-1][0].shape[1]

    w1 = jnp.zeros((n_input, HID), jnp.bfloat16)
    w1 = w1.at[:, :params[0][0].shape[1]].set(params[0][0].astype(jnp.bfloat16))

    wmid = jnp.zeros((n_layers - 2, HID, HID), jnp.bfloat16)
    for k in range(1, n_layers - 1):
        fin, fout = params[k][0].shape
        wmid = wmid.at[k - 1, :fin, :fout].set(params[k][0].astype(jnp.bfloat16))

    w_last = jnp.zeros((HID, n_output), jnp.bfloat16)
    w_last = w_last.at[:params[-1][0].shape[0], :].set(
        params[-1][0].astype(jnp.bfloat16))

    bmid = jnp.zeros((n_layers - 1, 1, HID), jnp.float32)
    for k in range(n_layers - 1):
        bmid = bmid.at[k, :, :params[k][1].shape[1]].set(
            params[k][1].astype(jnp.float32))

    b_last = params[-1][1].astype(jnp.float32).reshape(1, n_output)
    return (w1, wmid, w_last, bmid, b_last)


def crypto_net_forward(x, prepared, *, batch_tile=None):
    """Run Crypto_Net ('deep') forward pass via pallas_call.

    x: [B, n_input] float32 (cast to bf16 once here).
    prepared: output of prepare_params().
    Returns [B, n_output] float32.
    """
    w1, wmid, w_last, bmid, b_last = prepared
    B, n_input = x.shape
    assert n_input == w1.shape[0]
    n_output = w_last.shape[1]

    if batch_tile is None:
        batch_tile = _pick_batch_tile(B)
    assert batch_tile % 16 == 0, "batch_tile must be a multiple of 16 (bf16 sublanes)"
    B_pad = _round_up(B, batch_tile)

    x_bf = x.astype(jnp.bfloat16)
    if B_pad != B:
        x_bf = jnp.zeros((B_pad, n_input), jnp.bfloat16).at[:B].set(x_bf)

    grid = (B_pad // batch_tile,)

    in_specs = [
        # x: tile over batch, full (unpadded) 32-wide feature dim -> lane-light DMA.
        pl.BlockSpec((batch_tile, n_input), lambda i: (i, 0)),
        # Invariant params: constant block index -> pipeline skips re-copies.
        pl.BlockSpec(w1.shape, lambda i: (0, 0)),
        pl.BlockSpec(wmid.shape, lambda i: (0, 0, 0)),
        pl.BlockSpec(w_last.shape, lambda i: (0, 0)),
        pl.BlockSpec(bmid.shape, lambda i: (0, 0, 0)),
        pl.BlockSpec(b_last.shape, lambda i: (0, 0)),
    ]
    # Real 8-wide output (full-dim exception): 16x less writeback, no col slice.
    out_spec = pl.BlockSpec((batch_tile, n_output), lambda i: (i, 0))

    flops = 2 * B_pad * (w1.shape[0] * w1.shape[1]
                         + wmid.shape[0] * HID * HID
                         + HID * n_output)
    bytes_accessed = (x_bf.size * 2
                      + (w1.size + wmid.size + w_last.size) * 2
                      + (bmid.size + b_last.size) * 4
                      + B_pad * n_output * 4)

    y = pl.pallas_call(
        _mlp_kernel,
        out_shape=jax.ShapeDtypeStruct((B_pad, n_output), jnp.float32),
        grid_spec=pltpu.PrefetchScalarGridSpec(
            num_scalar_prefetch=0,
            grid=grid,
            in_specs=in_specs,
            out_specs=out_spec,
        ),
        compiler_params=pltpu.CompilerParams(
            dimension_semantics=("parallel",),  # batch axis -> v7x megacore sharding
        ),
        cost_estimate=pl.CostEstimate(
            flops=flops, transcendentals=0, bytes_accessed=bytes_accessed),
    )(x_bf, w1, wmid, w_last, bmid, b_last)

    return y[:B] if B_pad != B else y


def init_params(key, layer_sizes):
    """Deterministic init of (W [in,out], b [1,out]) for each Linear layer."""
    params = []
    for (fan_in, fan_out) in zip(layer_sizes[:-1], layer_sizes[1:]):
        key, kw, kb = jax.random.split(key, 3)
        bound = 1.0 / jnp.sqrt(fan_in)
        w = jax.random.uniform(kw, (fan_in, fan_out), jnp.float32, -bound, bound)
        b = jax.random.uniform(kb, (1, fan_out), jnp.float32, -bound, bound)
        params.append((w, b))
    return params


def reference_forward(x, params):
    """Pure-JAX reference mirroring the kernel's bf16-operand / f32-accum math."""
    h = x.astype(jnp.float32)
    n = len(params)
    for idx, (w, b) in enumerate(params):
        h = jnp.dot(h.astype(jnp.bfloat16), w.astype(jnp.bfloat16),
                    preferred_element_type=jnp.float32) + b
        if idx < n - 1:
            h = jnp.maximum(h, LEAKY_SLOPE * h)
    return h


if __name__ == "__main__":
    # p = {'type': 'deep', 'n_input': 32, 'n_hidden1': 64, 'n_hidden2': 64,
    #      'n_hidden3': 32, 'n_hidden4': 32, 'n_output': 8, 'dropout_prob': 0.1}
    layer_sizes = [32, 64, 64, 32, 32, 8]

    key = jax.random.PRNGKey(0)
    key, kp = jax.random.split(key)
    params = init_params(kp, layer_sizes)
    prepared = prepare_params(params)   # pad/cast/pack once, outside the hot path

    # Case 1: moderate batch (single-step tile, whole batch resident).
    # Case 2: tiny batch (pure latency regime; kernel must still be correct).
    for B in (256, 8):
        key, kx = jax.random.split(key)
        x = jax.random.normal(kx, (B, layer_sizes[0]), jnp.float32)

        out = crypto_net_forward(x, prepared)
        out = jax.block_until_ready(out)

        ref = reference_forward(x, params)
        assert out.shape == (B, layer_sizes[-1])
        assert jnp.allclose(out, ref, atol=2e-3, rtol=2e-3), (
            f"mismatch vs JAX reference at B={B}")

    print("KERNEL_OK")
</pallas_src>

<mosaic_0001>
module attributes {stable_mosaic.version = 11 : i64} {
  func.func @_mlp_kernel(%arg0: i32, %arg1: memref<256x32xbf16, #tpu.memory_space<vmem>>, %arg2: memref<32x128xbf16, #tpu.memory_space<vmem>>, %arg3: memref<3x128x128xbf16, #tpu.memory_space<vmem>>, %arg4: memref<128x8xbf16, #tpu.memory_space<vmem>>, %arg5: memref<4x1x128xf32, #tpu.memory_space<vmem>>, %arg6: memref<1x8xf32, #tpu.memory_space<vmem>>, %arg7: memref<256x8xf32, #tpu.memory_space<vmem>>) attributes {dimension_semantics = [#tpu.dimension_semantics<parallel>], iteration_bounds = array<i64: 1>, scalar_prefetch = 0 : i64, scratch_operands = 0 : i64, tpu.core_type = #tpu.core_type<tc>, window_params = [{transform_indices = @transform_0, window_bounds = array<i64: 256, 32>}, {pipeline_mode = #tpu.pipeline_mode<synchronous>, transform_indices = @transform_1, window_bounds = array<i64: 32, 128>}, {pipeline_mode = #tpu.pipeline_mode<synchronous>, transform_indices = @transform_2, window_bounds = array<i64: 3, 128, 128>}, {pipeline_mode = #tpu.pipeline_mode<synchronous>, transform_indices = @transform_3, window_bounds = array<i64: 128, 8>}, {pipeline_mode = #tpu.pipeline_mode<synchronous>, transform_indices = @transform_4, window_bounds = array<i64: 4, 1, 128>}, {pipeline_mode = #tpu.pipeline_mode<synchronous>, transform_indices = @transform_5, window_bounds = array<i64: 1, 8>}, {transform_indices = @transform_6, window_bounds = array<i64: 256, 8>}]} {
    %c0 = arith.constant 0 : index
    %c0_0 = arith.constant 0 : index
    %0 = vector.load %arg1[%c0, %c0_0] : memref<256x32xbf16, #tpu.memory_space<vmem>>, vector<256x32xbf16>
    %c0_1 = arith.constant 0 : index
    %c0_2 = arith.constant 0 : index
    %1 = vector.load %arg2[%c0_1, %c0_2] : memref<32x128xbf16, #tpu.memory_space<vmem>>, vector<32x128xbf16>
    %cst = arith.constant dense<0.000000e+00> : vector<256x128xf32>
    %2 = tpu.matmul %0, %1, %cst {dimension_numbers = #tpu.dot_dimension_numbers<[1], [0], [0], [1], [0, 0, 1, 1], [], []>} : vector<256x32xbf16>, vector<32x128xbf16>, vector<256x128xf32> -> vector<256x128xf32>
    %c0_3 = arith.constant 0 : index
    %c0_4 = arith.constant 0 : index
    %c0_5 = arith.constant 0 : index
    %3 = vector.load %arg5[%c0_3, %c0_4, %c0_5] : memref<4x1x128xf32, #tpu.memory_space<vmem>>, vector<1x1x128xf32>
    %4 = vector.shape_cast %3 : vector<1x1x128xf32> to vector<1x128xf32>
    %5 = vector.broadcast %4 : vector<1x128xf32> to vector<256x128xf32>
    %6 = arith.addf %2, %5 : vector<256x128xf32>
    %cst_6 = arith.constant 0.00999999977 : f32
    %7 = vector.broadcast %cst_6 : f32 to vector<256x128xf32>
    %8 = arith.mulf %7, %6 : vector<256x128xf32>
    %9 = arith.maximumf %6, %8 : vector<256x128xf32>
    %10 = arith.truncf %9 : vector<256x128xf32> to vector<256x128xbf16>
    %c0_7 = arith.constant 0 : index
    %c0_8 = arith.constant 0 : index
    %c0_9 = arith.constant 0 : index
    %11 = vector.load %arg3[%c0_7, %c0_8, %c0_9] : memref<3x128x128xbf16, #tpu.memory_space<vmem>>, vector<1x128x128xbf16>
    %12 = vector.shape_cast %11 : vector<1x128x128xbf16> to vector<128x128xbf16>
    %cst_10 = arith.constant dense<0.000000e+00> : vector<256x128xf32>
    %13 = tpu.matmul %10, %12, %cst_10 {dimension_numbers = #tpu.dot_dimension_numbers<[1], [0], [0], [1], [0, 0, 1, 1], [], []>} : vector<256x128xbf16>, vector<128x128xbf16>, vector<256x128xf32> -> vector<256x128xf32>
    %c1 = arith.constant 1 : index
    %c0_11 = arith.constant 0 : index
    %c0_12 = arith.constant 0 : index
    %14 = vector.load %arg5[%c1, %c0_11, %c0_12] : memref<4x1x128xf32, #tpu.memory_space<vmem>>, vector<1x1x128xf32>
    %15 = vector.shape_cast %14 : vector<1x1x128xf32> to vector<1x128xf32>
    %16 = vector.broadcast %15 : vector<1x128xf32> to vector<256x128xf32>
    %17 = arith.addf %13, %16 : vector<256x128xf32>
    %cst_13 = arith.constant 0.00999999977 : f32
    %18 = vector.broadcast %cst_13 : f32 to vector<256x128xf32>
    %19 = arith.mulf %18, %17 : vector<256x128xf32>
    %20 = arith.maximumf %17, %19 : vector<256x128xf32>
    %21 = arith.truncf %20 : vector<256x128xf32> to vector<256x128xbf16>
    %c1_14 = arith.constant 1 : index
    %c0_15 = arith.constant 0 : index
    %c0_16 = arith.constant 0 : index
    %22 = vector.load %arg3[%c1_14, %c0_15, %c0_16] : memref<3x128x128xbf16, #tpu.memory_space<vmem>>, vector<1x128x128xbf16>
    %23 = vector.shape_cast %22 : vector<1x128x128xbf16> to vector<128x128xbf16>
    %cst_17 = arith.constant dense<0.000000e+00> : vector<256x128xf32>
    %24 = tpu.matmul %21, %23, %cst_17 {dimension_numbers = #tpu.dot_dimension_numbers<[1], [0], [0], [1], [0, 0, 1, 1], [], []>} : vector<256x128xbf16>, vector<128x128xbf16>, vector<256x128xf32> -> vector<256x128xf32>
    %c2 = arith.constant 2 : index
    %c0_18 = arith.constant 0 : index
    %c0_19 = arith.constant 0 : index
    %25 = vector.load %arg5[%c2, %c0_18, %c0_19] : memref<4x1x128xf32, #tpu.memory_space<vmem>>, vector<1x1x128xf32>
    %26 = vector.shape_cast %25 : vector<1x1x128xf32> to vector<1x128xf32>
    %27 = vector.broadcast %26 : vector<1x128xf32> to vector<256x128xf32>
    %28 = arith.addf %24, %27 : vector<256x128xf32>
    %cst_20 = arith.constant 0.00999999977 : f32
    %29 = vector.broadcast %cst_20 : f32 to vector<256x128xf32>
    %30 = arith.mulf %29, %28 : vector<256x128xf32>
    %31 = arith.maximumf %28, %30 : vector<256x128xf32>
    %32 = arith.truncf %31 : vector<256x128xf32> to vector<256x128xbf16>
    %c2_21 = arith.constant 2 : index
    %c0_22 = arith.constant 0 : index
    %c0_23 = arith.constant 0 : index
    %33 = vector.load %arg3[%c2_21, %c0_22, %c0_23] : memref<3x128x128xbf16, #tpu.memory_space<vmem>>, vector<1x128x128xbf16>
    %34 = vector.shape_cast %33 : vector<1x128x128xbf16> to vector<128x128xbf16>
    %cst_24 = arith.constant dense<0.000000e+00> : vector<256x128xf32>
    %35 = tpu.matmul %32, %34, %cst_24 {dimension_numbers = #tpu.dot_dimension_numbers<[1], [0], [0], [1], [0, 0, 1, 1], [], []>} : vector<256x128xbf16>, vector<128x128xbf16>, vector<256x128xf32> -> vector<256x128xf32>
    %c3 = arith.constant 3 : index
    %c0_25 = arith.constant 0 : index
    %c0_26 = arith.constant 0 : index
    %36 = vector.load %arg5[%c3, %c0_25, %c0_26] : memref<4x1x128xf32, #tpu.memory_space<vmem>>, vector<1x1x128xf32>
    %37 = vector.shape_cast %36 : vector<1x1x128xf32> to vector<1x128xf32>
    %38 = vector.broadcast %37 : vector<1x128xf32> to vector<256x128xf32>
    %39 = arith.addf %35, %38 : vector<256x128xf32>
    %cst_27 = arith.constant 0.00999999977 : f32
    %40 = vector.broadcast %cst_27 : f32 to vector<256x128xf32>
    %41 = arith.mulf %40, %39 : vector<256x128xf32>
    %42 = arith.maximumf %39, %41 : vector<256x128xf32>
    %43 = arith.truncf %42 : vector<256x128xf32> to vector<256x128xbf16>
    %c0_28 = arith.constant 0 : index
    %c0_29 = arith.constant 0 : index
    %44 = vector.load %arg4[%c0_28, %c0_29] : memref<128x8xbf16, #tpu.memory_space<vmem>>, vector<128x8xbf16>
    %cst_30 = arith.constant dense<0.000000e+00> : vector<256x8xf32>
    %45 = tpu.matmul %43, %44, %cst_30 {dimension_numbers = #tpu.dot_dimension_numbers<[1], [0], [0], [1], [0, 0, 1, 1], [], []>} : vector<256x128xbf16>, vector<128x8xbf16>, vector<256x8xf32> -> vector<256x8xf32>
    %c0_31 = arith.constant 0 : index
    %c0_32 = arith.constant 0 : index
    %46 = vector.load %arg6[%c0_31, %c0_32] : memref<1x8xf32, #tpu.memory_space<vmem>>, vector<1x8xf32>
    %47 = vector.broadcast %46 : vector<1x8xf32> to vector<256x8xf32>
    %48 = arith.addf %45, %47 : vector<256x8xf32>
    %c0_33 = arith.constant 0 : index
    %c0_34 = arith.constant 0 : index
    %49 = vector.load %arg7[%c0_33, %c0_34] : memref<256x8xf32, #tpu.memory_space<vmem>>, vector<256x8xf32>
    tpu.vector_store %arg7[%c0_33, %c0_34], %48 {strides = array<i32>} : memref<256x8xf32, #tpu.memory_space<vmem>>, vector<256x8xf32>,
    return
  }
  func.func @transform_0(%arg0: i32) -> (i32, i32) {
    %c0_i32 = arith.constant 0 : i32
    %c0_i32_0 = arith.constant 0 : i32
    return %arg0, %c0_i32 : i32, i32
  }
  func.func @transform_1(%arg0: i32) -> (i32, i32) {
    %c0_i32 = arith.constant 0 : i32
    %c0_i32_0 = arith.constant 0 : i32
    %c0_i32_1 = arith.constant 0 : i32
    return %c0_i32, %c0_i32_0 : i32, i32
  }
  func.func @transform_2(%arg0: i32) -> (i32, i32, i32) {
    %c0_i32 = arith.constant 0 : i32
    %c0_i32_0 = arith.constant 0 : i32
    %c0_i32_1 = arith.constant 0 : i32
    %c0_i32_2 = arith.constant 0 : i32
    return %c0_i32, %c0_i32_0, %c0_i32_1 : i32, i32, i32
  }
  func.func @transform_3(%arg0: i32) -> (i32, i32) {
    %c0_i32 = arith.constant 0 : i32
    %c0_i32_0 = arith.constant 0 : i32
    %c0_i32_1 = arith.constant 0 : i32
    return %c0_i32, %c0_i32_0 : i32, i32
  }
  func.func @transform_4(%arg0: i32) -> (i32, i32, i32) {
    %c0_i32 = arith.constant 0 : i32
    %c0_i32_0 = arith.constant 0 : i32
    %c0_i32_1 = arith.constant 0 : i32
    %c0_i32_2 = arith.constant 0 : i32
    return %c0_i32, %c0_i32_0, %c0_i32_1 : i32, i32, i32
  }
  func.func @transform_5(%arg0: i32) -> (i32, i32) {
    %c0_i32 = arith.constant 0 : i32
    %c0_i32_0 = arith.constant 0 : i32
    %c0_i32_1 = arith.constant 0 : i32
    return %c0_i32, %c0_i32_0 : i32, i32
  }
  func.func @transform_6(%arg0: i32) -> (i32, i32) {
    %c0_i32 = arith.constant 0 : i32
    %c0_i32_0 = arith.constant 0 : i32
    return %arg0, %c0_i32 : i32, i32
  }
}

</mosaic_0001>

<bundles_post_ra>
// kernel: tpu_custom_call.1
= control target key start
LH: loop header
LB: loop body
LE: loop exit
PB: predicated region body
PF: predicated region fallthrough
CT: control target
= control target key end

     0   :  { %vm159_vm0 = vcmask 261120   ;;  %vm1622_vm1 = vcmask 64512   ;;  %s2693_s1 = inlined_call_operand.vmem [shape: bf16[32,128], index: 1, kind: input, shape index: {}]   ;;  %s2694_s0 = inlined_call_operand.vmem [shape: bf16[256,32], index: 0, kind: input, shape index: {}]   ;;  %s2695_s2 = inlined_call_operand.vmem [shape: bf16[3,128,128], index: 2, kind: input, shape index: {}]   ;;  %s2696_s4 = inlined_call_operand.vmem [shape: f32[4,1,128], index: 4, kind: input, shape index: {}]   ;;  %s2697_s3 = inlined_call_operand.vmem [shape: bf16[128,8], index: 3, kind: input, shape index: {}]   ;;  %s2698_s5 = inlined_call_operand.vmem [shape: f32[1,8], index: 5, kind: input, shape index: {}]   ;;  %s2699_s6 = inlined_call_operand.vmem [shape: f32[256,8], index: 6, kind: output, shape index: {}]  }
   0x1   :  { %v2111_v0 = vld [vmem:[%s2693_s1 + $0x8] sm:$0xff]   ;;  %v2112_v1 = vld [vmem:[%s2693_s1] sm:$0xff]   ;;  %v2115_v4 = vld [vmem:[%s2694_s0 + $0x10] sm:$0xff]  }
   0x2   :  { %1879 = vmatprep.subr.bf16.mxu0 %v2111_v0  ;;  %v2113_v2 = vld [vmem:[%s2694_s0] sm:$0xff]   ;;  %2107 = vmatprep.subr.bf16.mxu1 %v2111_v0  ;;  %v2114_v3 = vld [vmem:[%s2694_s0 + $0x8] sm:$0xff]   ;;  %v2123_v7 = vld [vmem:[%s2694_s0 + $0x50] sm:$0xff]  }
   0x3   :  { %1880 = vmatpush3.bf16.msra.mxu0 %v2111_v0  ;;  %2109 = vmatpush3.bf16.msra.mxu1 %v2111_v0  ;;  %v2120_v5 = vld [vmem:[%s2694_s0 + $0x40] sm:$0xff]   ;;  %v2122_v6 = vld [vmem:[%s2694_s0 + $0x48] sm:$0xff]   ;;  %v2116_v8 = vld [vmem:[%s2694_s0 + $0x18] sm:$0xff]  }
   0x4   :  { %1881 = vmatprep.subr.bf16.mxu0 %v2112_v1  ;;  %1883 = vmatprep.mubr.msk.bf16.mxu0 %vm159_vm0, %v2113_v2  ;;  %v2117_v9 = vld [vmem:[%s2694_s0 + $0x20] sm:$0xff]   ;;  %v2124_v10 = vld [vmem:[%s2694_s0 + $0x58] sm:$0xff]   ;;  %v2130_v13 = vld [vmem:[%s2695_s2 + $0x30] sm:$0xff]  }
   0x5   :  { %2108 = vmatprep.subr.bf16.mxu1 %v2112_v1  ;;  %1899 = vmatprep.mubr.msk.bf16.mxu1 %vm159_vm0, %v2120_v5  ;;  %v2125_v11 = vld [vmem:[%s2694_s0 + $0x60] sm:$0xff]   ;;  %v2129_v12 = vld [vmem:[%s2695_s2 + $0x38] sm:$0xff]   ;;  %v2118_v14 = vld [vmem:[%s2694_s0 + $0x28] sm:$0xff]  }
   0x6   :  { %v2119_v15 = vld [vmem:[%s2694_s0 + $0x30] sm:$0xff]   ;;  %v2131_v16 = vld [vmem:[%s2695_s2 + $0x28] sm:$0xff]   ;;  %v2132_v19 = vld [vmem:[%s2695_s2 + $0x20] sm:$0xff]  }
   0x7   :  { %1882 = vmatpush3.bf16.msra.mxu0 %v2112_v1  ;;  %2110 = vmatpush3.bf16.msra.mxu1 %v2112_v1  ;;  %v2126_v17 = vld [vmem:[%s2694_s0 + $0x68] sm:$0xff]   ;;  %v2127_v18 = vld [vmem:[%s2694_s0 + $0x70] sm:$0xff]   ;;  %v2121_v20 = vld [vmem:[%s2694_s0 + $0x38] sm:$0xff]  }
   0x8   :  { %1915 = vmatprep.subr.bf16.mxu1 %v2129_v12  ;;  %v2133_v21 = vld [vmem:[%s2695_s2 + $0x18] sm:$0xff]   ;;  %v2134_v23 = vld [vmem:[%s2695_s2 + $0x10] sm:$0xff]   ;;  %v2135_v24 = vld [vmem:[%s2695_s2 + $0x8] sm:$0xff]  }
   0x9   :  { %v2128_v22 = vld [vmem:[%s2694_s0 + $0x78] sm:$0xff]   ;;  %v2136_v25 = vld [vmem:[%s2695_s2] sm:$0xff]   ;;  %v2138_v27 = vld [vmem:[%s2695_s2 + $0x70] sm:$0xff]  }
   0xa   :  { %1884 = vmatmul.mubr.msk.bf16.vlgmr.msra.gmra.mxu0 %vm159_vm0, %v2114_v3  ;;  %1900 = vmatmul.mubr.msk.bf16.vlgmr.msra.gmra.mxu1 %vm159_vm0, %v2122_v6  ;;  %v2137_v26 = vld [vmem:[%s2695_s2 + $0x78] sm:$0xff]   ;;  %v2139_v28 = vld [vmem:[%s2695_s2 + $0x68] sm:$0xff]   ;;  %v2140_v29 = vld [vmem:[%s2695_s2 + $0x60] sm:$0xff]  }
   0xb   :  { %1887 = vmatprep.mubr.msk.bf16.mxu0 %vm159_vm0, %v2115_v4  ;;  %1903 = vmatprep.mubr.msk.bf16.mxu1 %vm159_vm0, %v2123_v7  ;;  %v2141_v30 = vld [vmem:[%s2695_s2 + $0x58] sm:$0xff]   ;;  %v2308_v32 = vld [vmem:[%s2696_s4] ss:$0 sm:$0xff] }
   0xc   :  { %1916 = vmatpush3.bf16.msra.mxu1 %v2129_v12  ;;  %1963 = vmatprep.subr.bf16.mxu0 %v2137_v26 }
   0xd   :  { %1917 = vmatprep.subr.bf16.mxu1 %v2130_v13  ;;  %1964 = vmatpush3.bf16.msra.mxu0 %v2137_v26 }
   0xe   :  { %1965 = vmatprep.subr.bf16.mxu0 %v2138_v27 }
  0x10   :  { %1918 = vmatpush3.bf16.msra.mxu1 %v2130_v13 }
  0x11   :  { %1919 = vmatprep.subr.bf16.mxu1 %v2131_v16  ;;  %1966 = vmatpush3.bf16.msra.mxu0 %v2138_v27 }
  0x12   :  { %1888 = vmatmul.mubr.msk.bf16.gmra.mxu0 %vm159_vm0, %v2116_v8  ;;  %1904 = vmatmul.mubr.msk.bf16.gmra.mxu1 %vm159_vm0, %v2124_v10 }
  0x13   :  { %1891 = vmatprep.mubr.msk.bf16.mxu0 %vm159_vm0, %v2117_v9  ;;  %1907 = vmatprep.mubr.msk.bf16.mxu1 %vm159_vm0, %v2125_v11 }
  0x14   :  { %1920 = vmatpush3.bf16.msra.mxu1 %v2131_v16  ;;  %1967 = vmatprep.subr.bf16.mxu0 %v2139_v28 }
  0x15   :  { %1921 = vmatprep.subr.bf16.mxu1 %v2132_v19  ;;  %1968 = vmatpush3.bf16.msra.mxu0 %v2139_v28 }
  0x16   :  { %1969 = vmatprep.subr.bf16.mxu0 %v2140_v29 }
  0x18   :  { %1922 = vmatpush3.bf16.msra.mxu1 %v2132_v19 }
  0x19   :  { %1923 = vmatprep.subr.bf16.mxu1 %v2133_v21  ;;  %1970 = vmatpush3.bf16.msra.mxu0 %v2140_v29 }
  0x1a   :  { %1892 = vmatmul.mubr.msk.bf16.gmra.mxu0 %vm159_vm0, %v2118_v14  ;;  %1908 = vmatmul.mubr.msk.bf16.gmra.mxu1 %vm159_vm0, %v2126_v17 }
  0x1b   :  { %1895 = vmatprep.mubr.msk.bf16.mxu0 %vm159_vm0, %v2119_v15  ;;  %1911 = vmatprep.mubr.msk.bf16.mxu1 %vm159_vm0, %v2127_v18 }
  0x1c   :  { %1924 = vmatpush3.bf16.msra.mxu1 %v2133_v21  ;;  %1971 = vmatprep.subr.bf16.mxu0 %v2141_v30 }
  0x1d   :  { %1925 = vmatprep.subr.bf16.mxu1 %v2134_v23  ;;  %1972 = vmatpush3.bf16.msra.mxu0 %v2141_v30 }
  0x20   :  { %1926 = vmatpush3.bf16.msra.mxu1 %v2134_v23 }
  0x21   :  { %1927 = vmatprep.subr.bf16.mxu1 %v2135_v24 }
  0x22   :  { %1896 = vmatmul.mubr.msk.bf16.gmra.mxu0 %vm159_vm0, %v2121_v20  ;;  %1912 = vmatmul.mubr.msk.bf16.gmra.mxu1 %vm159_vm0, %v2128_v22 }
  0x24   :  { %1928 = vmatpush3.bf16.msra.mxu1 %v2135_v24 }
  0x25   :  { %1929 = vmatprep.subr.bf16.mxu1 %v2136_v25 }
  0x28   :  { %1930 = vmatpush3.bf16.msra.mxu1 %v2136_v25 }
  0xca   :  { %v1885_v31 = vpop.f32.mrf.mxu0  ;;  %v2311_v35 = vpop.f32.mrf.mxu1 }
  0xcb   :  { %v251_v36 = vadd.f32 %v1885_v31, %v2308_v32 }
  0xcc   :  { %v242_v33 = vpop.f32.mrf.mxu0  ;;  %v306_v39 = vpop.f32.mrf.mxu1 }
  0xcd   :  { %v243_v34 = vadd.f32 %v2308_v32, %v242_v33  ;;  %v371_v45 = vmul.f32 0.01, %v251_v36  ;;  %v307_v29 = vadd.f32 %v2308_v32, %v306_v39 }
  0xce   :  { %v1886_v37 = vpop.f32.mrf.mxu0  ;;  %v2316_v44 = vpop.f32.mrf.mxu1 }
  0xcf   :  { %v254_v38 = vadd.f32 %v1886_v37, %v2308_v32  ;;  %v369_v41 = vmul.f32 0.01, %v243_v34  ;;  %v403_v55 = vmax.f32 %v251_v36, %v371_v45 }
  0xd0   :  { %v245_v40 = vpop.f32.mrf.mxu0  ;;  %v309_v48 = vpop.f32.mrf.mxu1 }
  0xd1   :  { %v372_v42 = vmul.f32 0.01, %v254_v38  ;;  %v246_v43 = vadd.f32 %v2308_v32, %v245_v40  ;;  %v401_v51 = vmax.f32 %v243_v34, %v369_v41  ;;  %v310_v30 = vadd.f32 %v2308_v32, %v309_v48 }
  0xd2   :  { %v1889_v46 = vpop.f32.mrf.mxu0  ;;  %v2319_v54 = vpop.f32.mrf.mxu1 }
  0xd3   :  { %v370_v47 = vmul.f32 0.01, %v246_v43  ;;  %v404_v49 = vmax.f32 %v254_v38, %v372_v42  ;;  %v267_v56 = vadd.f32 %v1889_v46, %v2308_v32  ;;  %v386_v46 = vmul.f32 0.01, %v310_v30 }
  0xd4   :  { %v258_v50 = vpop.f32.mrf.mxu0  ;;  %v2323_v60 = vpop.f32.mrf.mxu1 }
  0xd5   :  { %v402_v52 = vmax.f32 %v246_v43, %v370_v47  ;;  %v259_v53 = vadd.f32 %v2308_v32, %v258_v50  ;;  %v434_v61 = vpack.c.bf16 %v404_v49, %v403_v55  ;;  %v375_v3 = vmul.f32 0.01, %v267_v56 }
  0xd6   :  { %v1890_v57 = vpop.f32.mrf.mxu0  ;;  %v2326_v2 = vpop.f32.mrf.mxu1  ;;  %v385_v43 = vmul.f32 0.01, %v307_v29 }
  0xd7   :  { %v270_v58 = vadd.f32 %v1890_v57, %v2308_v32  ;;  %v433_v59 = vpack.c.bf16 %v402_v52, %v401_v51  ;;  %v373_v63 = vmul.f32 0.01, %v259_v53  ;;  %v407_v12 = vmax.f32 %v267_v56, %v375_v3 }
  0xd8   :  { %v261_v62 = vpop.f32.mrf.mxu0  ;;  %v325_v6 = vpop.f32.mrf.mxu1  ;;  %v315_v52 = vadd.f32 %v2311_v35, %v2308_v32  ;;  %v417_v55 = vmax.f32 %v307_v29, %v385_v43  ;;  %v318_v57 = vadd.f32 %v2316_v44, %v2308_v32 }
  0xd9   :  { %v376_v0 = vmul.f32 0.01, %v270_v58  ;;  %v262_v1 = vadd.f32 %v2308_v32, %v261_v62  ;;  %1931 = vmatprep.mubr.bf16.mxu1 %v433_v59  ;;  %v405_v9 = vmax.f32 %v259_v53, %v373_v63  ;;  %v323_v62 = vadd.f32 %v2308_v32, %v2323_v60 }
  0xda   :  { %v1893_v4 = vpop.f32.mrf.mxu0  ;;  %1932 = vmatmul.mubr.bf16.vlgmr.msra.gmra.mxu1 %v434_v61  ;;  %v2330_v15 = vpop.f32.mrf.mxu1  ;;  %v326_v63 = vadd.f32 %v2308_v32, %v325_v6  ;;  %v331_v60 = vadd.f32 %v2319_v54, %v2308_v32  ;;  %v334_v6 = vadd.f32 %v2326_v2, %v2308_v32 }
  0xdb   :  { %v374_v5 = vmul.f32 0.01, %v262_v1  ;;  %v408_v7 = vmax.f32 %v270_v58, %v376_v0  ;;  %v283_v13 = vadd.f32 %v1893_v4, %v2308_v32  ;;  %v418_v58 = vmax.f32 %v310_v30, %v386_v46 }
  0xdc   :  { %v274_v8 = vpop.f32.mrf.mxu0  ;;  %v338_v25 = vpop.f32.mrf.mxu1  ;;  %v387_v4 = vmul.f32 0.01, %v315_v52  ;;  %v347_v2 = vadd.f32 %v2330_v15, %v2308_v32 }
  0xdd   :  { %v406_v10 = vmax.f32 %v262_v1, %v374_v5  ;;  %v275_v11 = vadd.f32 %v2308_v32, %v274_v8  ;;  %v436_v19 = vpack.c.bf16 %v408_v7, %v407_v12  ;;  %v379_v23 = vmul.f32 0.01, %v283_v13 }
  0xde   :  { %v1894_v14 = vpop.f32.mrf.mxu0  ;;  %v1910_v40 = vpop.f32.mrf.mxu1  ;;  %v388_v5 = vmul.f32 0.01, %v318_v57  ;;  %v389_v7 = vmul.f32 0.01, %v323_v62  ;;  %v390_v8 = vmul.f32 0.01, %v326_v63 }
  0xdf   :  { %v286_v16 = vadd.f32 %v1894_v14, %v2308_v32  ;;  %v435_v17 = vpack.c.bf16 %v406_v10, %v405_v9  ;;  %v377_v20 = vmul.f32 0.01, %v275_v11  ;;  %v411_v36 = vmax.f32 %v283_v13, %v379_v23 }
  0xe0   :  { %v277_v18 = vpop.f32.mrf.mxu0  ;;  %v341_v51 = vpop.f32.mrf.mxu1  ;;  %v441_v9 = vpack.c.bf16 %v418_v58, %v417_v55  ;;  %v419_v10 = vmax.f32 %v315_v52, %v387_v4  ;;  %v421_v12 = vmax.f32 %v323_v62, %v389_v7  ;;  %v422_v13 = vmax.f32 %v326_v63, %v390_v8  ;;  %v2142_v52 = vld [vmem:[%s2695_s2 + $0x50] sm:$0xff]   ;;  %v2145_v55 = vld [vmem:[%s2695_s2 + $0xb8] sm:$0xff]   ;;  %v2148_v58 = vld [vmem:[%s2695_s2 + $0xa0] sm:$0xff]  }
  0xe1   :  { %v380_v21 = vmul.f32 0.01, %v286_v16  ;;  %v278_v22 = vadd.f32 %v2308_v32, %v277_v18  ;;  %1935 = vmatprep.mubr.bf16.mxu1 %v435_v17  ;;  %v409_v31 = vmax.f32 %v275_v11, %v377_v20  ;;  %v420_v11 = vmax.f32 %v318_v57, %v388_v5  ;;  %1973 = vmatprep.subr.bf16.mxu0 %v2142_v52  ;;  %v2147_v57 = vld [vmem:[%s2695_s2 + $0xa8] sm:$0xff]  }
  0xe2   :  { %v1897_v24 = vpop.f32.mrf.mxu0  ;;  %1936 = vmatmul.mubr.bf16.gmra.mxu1 %v436_v19  ;;  %v1913_v1 = vpop.f32.mrf.mxu1  ;;  %v339_v14 = vadd.f32 %v2308_v32, %v338_v25  ;;  %v391_v18 = vmul.f32 0.01, %v331_v60  ;;  %v392_v19 = vmul.f32 0.01, %v334_v6  ;;  %v443_v23 = vpack.c.bf16 %v422_v13, %v421_v12  ;;  %1974 = vmatpush3.bf16.msra.mxu0 %v2142_v52  ;;  %v2151_v62 = vld [vmem:[%s2695_s2 + $0x88] sm:$0xff]  }
  0xe3   :  { %v378_v26 = vmul.f32 0.01, %v278_v22  ;;  %v412_v27 = vmax.f32 %v286_v16, %v380_v21  ;;  %v299_v37 = vadd.f32 %v1897_v24, %v2308_v32  ;;  %v342_v16 = vadd.f32 %v2308_v32, %v341_v51  ;;  %2011 = vmatprep.subr.bf16.mxu1 %v2145_v55 }
  0xe4   :  { %v290_v28 = vpop.f32.mrf.mxu0  ;;  %v354_v44 = vpop.f32.mrf.mxu1  ;;  %v442_v20 = vpack.c.bf16 %v420_v11, %v419_v10  ;;  %v393_v21 = vmul.f32 0.01, %v339_v14  ;;  %v423_v54 = vmax.f32 %v331_v60, %v391_v18  ;;  %v363_v15 = vadd.f32 %v1913_v1, %v2308_v32  ;;  %2012 = vmatpush3.bf16.msra.mxu1 %v2145_v55 }
  0xe5   :  { %v410_v33 = vmax.f32 %v278_v22, %v378_v26  ;;  %v291_v34 = vadd.f32 %v2308_v32, %v290_v28  ;;  %v438_v47 = vpack.c.bf16 %v412_v27, %v411_v36  ;;  %v383_v50 = vmul.f32 0.01, %v299_v37 }
  0xe6   :  { %v1898_v38 = vpop.f32.mrf.mxu0  ;;  %v1914_v17 = vpop.f32.mrf.mxu1  ;;  %v394_v22 = vmul.f32 0.01, %v342_v16  ;;  %v424_v26 = vmax.f32 %v334_v6, %v392_v19  ;;  %v350_v27 = vadd.f32 %v1910_v40, %v2308_v32  ;;  %v425_v25 = vmax.f32 %v339_v14, %v393_v21 }
  0xe7   :  { %v302_v41 = vadd.f32 %v1898_v38, %v2308_v32  ;;  %v437_v42 = vpack.c.bf16 %v410_v33, %v409_v31  ;;  %v381_v49 = vmul.f32 0.01, %v291_v34  ;;  %v415_v0 = vmax.f32 %v299_v37, %v383_v50 }
  0xe8   :  { %v293_v45 = vpop.f32.mrf.mxu0  ;;  %v357_v24 = vpop.f32.mrf.mxu1  ;;  %v426_v28 = vmax.f32 %v342_v16, %v394_v22  ;;  %v355_v29 = vadd.f32 %v2308_v32, %v354_v44  ;;  %v395_v31 = vmul.f32 0.01, %v347_v2  ;;  %v396_v33 = vmul.f32 0.01, %v350_v27 }
  0xe9   :  { %v384_v39 = vmul.f32 0.01, %v302_v41  ;;  %v294_v48 = vadd.f32 %v2308_v32, %v293_v45  ;;  %1939 = vmatprep.mubr.bf16.mxu1 %v437_v42  ;;  %v413_v59 = vmax.f32 %v291_v34, %v381_v49  ;;  %v358_v30 = vadd.f32 %v2308_v32, %v357_v24 }
  0xea   :  { %1940 = vmatmul.mubr.bf16.gmra.mxu1 %v438_v47  ;;  %v444_v34 = vpack.c.bf16 %v424_v26, %v423_v54  ;;  %v397_v36 = vmul.f32 0.01, %v355_v29  ;;  %v445_v38 = vpack.c.bf16 %v426_v28, %v425_v25  ;;  %v428_v42 = vmax.f32 %v350_v27, %v396_v33 }
  0xeb   :  { %v382_v53 = vmul.f32 0.01, %v294_v48  ;;  %v416_v56 = vmax.f32 %v302_v41, %v384_v39  ;;  %v398_v37 = vmul.f32 0.01, %v358_v30  ;;  %v427_v41 = vmax.f32 %v347_v2, %v395_v31 }
  0xec   :  { %v366_v40 = vadd.f32 %v1914_v17, %v2308_v32  ;;  %v429_v43 = vmax.f32 %v355_v29, %v397_v36  ;;  %v399_v46 = vmul.f32 0.01, %v363_v15  ;;  %v2143_v32 = vld [vmem:[%s2695_s2 + $0x48] sm:$0xff]  }
  0xed   :  { %v414_v61 = vmax.f32 %v294_v48, %v382_v53  ;;  %v440_v35 = vpack.c.bf16 %v416_v56, %v415_v0  ;;  %v430_v45 = vmax.f32 %v358_v30, %v398_v37  ;;  %v446_v49 = vpack.c.bf16 %v428_v42, %v427_v41  ;;  %1975 = vmatprep.subr.bf16.mxu0 %v2143_v32  ;;  %v2144_v53 = vld [vmem:[%s2695_s2 + $0x40] sm:$0xff]   ;;  %v2146_v56 = vld [vmem:[%s2695_s2 + $0xb0] sm:$0xff]  }
  0xee   :  { %v400_v47 = vmul.f32 0.01, %v366_v40  ;;  %v431_v48 = vmax.f32 %v363_v15, %v399_v46  ;;  %1976 = vmatpush3.bf16.msra.mxu0 %v2143_v32  ;;  %2013 = vmatprep.subr.bf16.mxu1 %v2146_v56  ;;  %v2393_v0 = vld [vmem:[%s2696_s4 + $0x1] ss:$0 sm:$0xff] }
  0xef   :  { %v439_v3 = vpack.c.bf16 %v414_v61, %v413_v59  ;;  %v447_v39 = vpack.c.bf16 %v430_v45, %v429_v43  ;;  %1977 = vmatprep.subr.bf16.mxu0 %v2144_v53  ;;  %2014 = vmatpush3.bf16.msra.mxu1 %v2146_v56  ;;  %v2149_v59 = vld [vmem:[%s2695_s2 + $0x98] sm:$0xff]   ;;  %v2150_v61 = vld [vmem:[%s2695_s2 + $0x90] sm:$0xff]  }
  0xf0   :  { %v432_v50 = vmax.f32 %v366_v40, %v400_v47  ;;  %2015 = vmatprep.subr.bf16.mxu1 %v2147_v57 }
  0xf1   :  { %1943 = vmatprep.mubr.bf16.mxu1 %v439_v3 }
  0xf2   :  { %1944 = vmatmul.mubr.bf16.gmra.mxu1 %v440_v35  ;;  %v448_v51 = vpack.c.bf16 %v432_v50, %v431_v48  ;;  %1978 = vmatpush3.bf16.msra.mxu0 %v2144_v53 }
  0xf3   :  { %1947 = vmatprep.mubr.bf16.mxu1 %v441_v9  ;;  %2016 = vmatpush3.bf16.msra.mxu1 %v2147_v57 }
  0xf4   :  { %2017 = vmatprep.subr.bf16.mxu1 %v2148_v58 }
  0xf7   :  { %2018 = vmatpush3.bf16.msra.mxu1 %v2148_v58 }
  0xf8   :  { %2019 = vmatprep.subr.bf16.mxu1 %v2149_v59 }
  0xfa   :  { %1948 = vmatmul.mubr.bf16.gmra.mxu1 %v442_v20 }
  0xfb   :  { %1951 = vmatprep.mubr.bf16.mxu1 %v443_v23  ;;  %2020 = vmatpush3.bf16.msra.mxu1 %v2149_v59 }
  0xfc   :  { %2021 = vmatprep.subr.bf16.mxu1 %v2150_v61 }
  0xff   :  { %2022 = vmatpush3.bf16.msra.mxu1 %v2150_v61 }
 0x100   :  { %2023 = vmatprep.subr.bf16.mxu1 %v2151_v62 }
 0x102   :  { %1952 = vmatmul.mubr.bf16.gmra.mxu1 %v444_v34 }
 0x103   :  { %1955 = vmatprep.mubr.bf16.mxu1 %v445_v38  ;;  %2024 = vmatpush3.bf16.msra.mxu1 %v2151_v62 }
 0x10a   :  { %1956 = vmatmul.mubr.bf16.gmra.mxu1 %v446_v49 }
 0x10b   :  { %1959 = vmatprep.mubr.bf16.mxu1 %v447_v39 }
 0x112   :  { %1960 = vmatmul.mubr.bf16.gmra.mxu1 %v448_v51 }
 0x19a   :  { %v1933_v63 = vpop.f32.mrf.mxu1 }
 0x19b   :  { %v564_v4 = vadd.f32 %v1933_v63, %v2393_v0 }
 0x19c   :  { %v555_v1 = vpop.f32.mrf.mxu1 }
 0x19d   :  { %v556_v3 = vadd.f32 %v2393_v0, %v555_v1  ;;  %v684_v10 = vmul.f32 0.01, %v564_v4 }
 0x19e   :  { %v1934_v5 = vpop.f32.mrf.mxu1 }
 0x19f   :  { %v567_v35 = vadd.f32 %v1934_v5, %v2393_v0  ;;  %v682_v8 = vmul.f32 0.01, %v556_v3  ;;  %v716_v17 = vmax.f32 %v564_v4, %v684_v10 }
 0x1a0   :  { %v558_v7 = vpop.f32.mrf.mxu1 }
 0x1a1   :  { %v685_v9 = vmul.f32 0.01, %v567_v35  ;;  %v559_v44 = vadd.f32 %v2393_v0, %v558_v7  ;;  %v714_v13 = vmax.f32 %v556_v3, %v682_v8 }
 0x1a2   :  { %v1937_v11 = vpop.f32.mrf.mxu1 }
 0x1a3   :  { %v683_v60 = vmul.f32 0.01, %v559_v44  ;;  %v717_v6 = vmax.f32 %v567_v35, %v685_v9  ;;  %v580_v18 = vadd.f32 %v1937_v11, %v2393_v0 }
 0x1a4   :  { %v571_v12 = vpop.f32.mrf.mxu1 }
 0x1a5   :  { %v715_v14 = vmax.f32 %v559_v44, %v683_v60  ;;  %v572_v16 = vadd.f32 %v2393_v0, %v571_v12  ;;  %v747_v22 = vpack.c.bf16 %v717_v6, %v716_v17  ;;  %v688_v2 = vmul.f32 0.01, %v580_v18 }
 0x1a6   :  { %v1938_v19 = vpop.f32.mrf.mxu1 }
 0x1a7   :  { %v583_v20 = vadd.f32 %v1938_v19, %v2393_v0  ;;  %v746_v21 = vpack.c.bf16 %v715_v14, %v714_v13  ;;  %v686_v24 = vmul.f32 0.01, %v572_v16  ;;  %v720_v34 = vmax.f32 %v580_v18, %v688_v2 }
 0x1a8   :  { %v574_v23 = vpop.f32.mrf.mxu1 }
 0x1a9   :  { %v689_v54 = vmul.f32 0.01, %v583_v20  ;;  %v575_v26 = vadd.f32 %v2393_v0, %v574_v23  ;;  %1979 = vmatprep.mubr.bf16.mxu0 %v746_v21  ;;  %v718_v30 = vmax.f32 %v572_v16, %v686_v24 }
 0x1aa   :  { %v1941_v27 = vpop.f32.mrf.mxu1  ;;  %1980 = vmatmul.mubr.bf16.vlgmr.msra.gmra.mxu0 %v747_v22 }
 0x1ab   :  { %v687_v25 = vmul.f32 0.01, %v575_v26  ;;  %v721_v28 = vmax.f32 %v583_v20, %v689_v54  ;;  %v596_v36 = vadd.f32 %v1941_v27, %v2393_v0 }
 0x1ac   :  { %v587_v29 = vpop.f32.mrf.mxu1 }
 0x1ad   :  { %v719_v31 = vmax.f32 %v575_v26, %v687_v25  ;;  %v588_v33 = vadd.f32 %v2393_v0, %v587_v29  ;;  %v749_v15 = vpack.c.bf16 %v721_v28, %v720_v34  ;;  %v692_v46 = vmul.f32 0.01, %v596_v36 }
 0x1ae   :  { %v1942_v37 = vpop.f32.mrf.mxu1 }
 0x1af   :  { %v599_v38 = vadd.f32 %v1942_v37, %v2393_v0  ;;  %v748_v41 = vpack.c.bf16 %v719_v31, %v718_v30  ;;  %v690_v40 = vmul.f32 0.01, %v588_v33  ;;  %v724_v32 = vmax.f32 %v596_v36, %v692_v46 }
 0x1b0   :  { %v590_v42 = vpop.f32.mrf.mxu1 }
 0x1b1   :  { %v693_v43 = vmul.f32 0.01, %v599_v38  ;;  %v591_v45 = vadd.f32 %v2393_v0, %v590_v42  ;;  %1983 = vmatprep.mubr.bf16.mxu0 %v748_v41  ;;  %v722_v50 = vmax.f32 %v588_v33, %v690_v40 }
 0x1b2   :  { %v1945_v47 = vpop.f32.mrf.mxu1  ;;  %1984 = vmatmul.mubr.bf16.gmra.mxu0 %v749_v15 }
 0x1b3   :  { %v691_v49 = vmul.f32 0.01, %v591_v45  ;;  %v725_v39 = vmax.f32 %v599_v38, %v693_v43  ;;  %v612_v53 = vadd.f32 %v1945_v47, %v2393_v0 }
 0x1b4   :  { %v603_v48 = vpop.f32.mrf.mxu1 }
 0x1b5   :  { %v723_v51 = vmax.f32 %v591_v45, %v691_v49  ;;  %v604_v52 = vadd.f32 %v2393_v0, %v603_v48  ;;  %v751_v59 = vpack.c.bf16 %v725_v39, %v724_v32  ;;  %v696_v1 = vmul.f32 0.01, %v612_v53 }
 0x1b6   :  { %v1946_v55 = vpop.f32.mrf.mxu1 }
 0x1b7   :  { %v615_v56 = vadd.f32 %v1946_v55, %v2393_v0  ;;  %v750_v57 = vpack.c.bf16 %v723_v51, %v722_v50  ;;  %v694_v61 = vmul.f32 0.01, %v604_v52  ;;  %v728_v44 = vmax.f32 %v612_v53, %v696_v1 }
 0x1b8   :  { %v606_v58 = vpop.f32.mrf.mxu1 }
 0x1b9   :  { %v697_v62 = vmul.f32 0.01, %v615_v56  ;;  %v607_v63 = vadd.f32 %v2393_v0, %v606_v58  ;;  %1987 = vmatprep.mubr.bf16.mxu0 %v750_v57  ;;  %v726_v7 = vmax.f32 %v604_v52, %v694_v61 }
 0x1ba   :  { %v1949_v3 = vpop.f32.mrf.mxu1  ;;  %1988 = vmatmul.mubr.bf16.gmra.mxu0 %v751_v59 }
 0x1bb   :  { %v695_v4 = vmul.f32 0.01, %v607_v63  ;;  %v729_v5 = vmax.f32 %v615_v56, %v697_v62  ;;  %v628_v10 = vadd.f32 %v1949_v3, %v2393_v0 }
 0x1bc   :  { %v619_v35 = vpop.f32.mrf.mxu1 }
 0x1bd   :  { %v727_v8 = vmax.f32 %v607_v63, %v695_v4  ;;  %v620_v9 = vadd.f32 %v2393_v0, %v619_v35  ;;  %v753_v13 = vpack.c.bf16 %v729_v5, %v728_v44  ;;  %v700_v18 = vmul.f32 0.01, %v628_v10 }
 0x1be   :  { %v1950_v11 = vpop.f32.mrf.mxu1 }
 0x1bf   :  { %v631_v60 = vadd.f32 %v1950_v11, %v2393_v0  ;;  %v752_v6 = vpack.c.bf16 %v727_v8, %v726_v7  ;;  %v698_v14 = vmul.f32 0.01, %v620_v9  ;;  %v732_v26 = vmax.f32 %v628_v10, %v700_v18  ;;  %v2154_v18 = vld [vmem:[%s2697_s3 + $0x30] sm:$0xff]  }
 0x1c0   :  { %v622_v12 = vpop.f32.mrf.mxu1 }
 0x1c1   :  { %v701_v16 = vmul.f32 0.01, %v631_v60  ;;  %v623_v17 = vadd.f32 %v2393_v0, %v622_v12  ;;  %1991 = vmatprep.mubr.bf16.mxu0 %v752_v6  ;;  %v730_v23 = vmax.f32 %v620_v9, %v698_v14 }
 0x1c2   :  { %v1953_v19 = vpop.f32.mrf.mxu1  ;;  %1992 = vmatmul.mubr.bf16.gmra.mxu0 %v753_v13 }
 0x1c3   :  { %v699_v20 = vmul.f32 0.01, %v623_v17  ;;  %v733_v21 = vmax.f32 %v631_v60, %v701_v16  ;;  %v644_v2 = vadd.f32 %v1953_v19, %v2393_v0  ;;  %v2155_v19 = vld [vmem:[%s2697_s3 + $0x28] sm:$0xff]  }
 0x1c4   :  { %v635_v22 = vpop.f32.mrf.mxu1 }
 0x1c5   :  { %v731_v24 = vmax.f32 %v623_v17, %v699_v20  ;;  %v636_v54 = vadd.f32 %v2393_v0, %v635_v22  ;;  %v755_v30 = vpack.c.bf16 %v733_v21, %v732_v26  ;;  %v704_v36 = vmul.f32 0.01, %v644_v2  ;;  %v2152_v17 = vld [vmem:[%s2695_s2 + $0x80] sm:$0xff]   ;;  %v2157_v21 = vld [vmem:[%s2697_s3 + $0x18] sm:$0xff]   ;;  %v2158_v22 = vld [vmem:[%s2697_s3 + $0x10] sm:$0xff]  }
 0x1c6   :  { %v1954_v27 = vpop.f32.mrf.mxu1  ;;  %2025 = vmatprep.subr.bf16.mxu1 %v2152_v17  ;;  %v2156_v20 = vld [vmem:[%s2697_s3 + $0x20] sm:$0xff]  }
 0x1c7   :  { %v647_v25 = vadd.f32 %v1954_v27, %v2393_v0  ;;  %v754_v28 = vpack.c.bf16 %v731_v24, %v730_v23  ;;  %v702_v31 = vmul.f32 0.01, %v636_v54  ;;  %v736_v45 = vmax.f32 %v644_v2, %v704_v36  ;;  %2026 = vmatpush3.bf16.msra.mxu1 %v2152_v17  ;;  %v2159_v23 = vld [vmem:[%s2697_s3 + $0x8] sm:$0xff]  }
 0x1c8   :  { %v638_v29 = vpop.f32.mrf.mxu1 }
 0x1c9   :  { %v705_v33 = vmul.f32 0.01, %v647_v25  ;;  %v639_v34 = vadd.f32 %v2393_v0, %v638_v29  ;;  %1995 = vmatprep.mubr.bf16.mxu0 %v754_v28  ;;  %v734_v15 = vmax.f32 %v636_v54, %v702_v31  ;;  %v2454_v54 = vld [vmem:[%s2696_s4 + $0x2] ss:$0 sm:$0xff] }
 0x1ca   :  { %v1957_v37 = vpop.f32.mrf.mxu1  ;;  %1996 = vmatmul.mubr.bf16.gmra.mxu0 %v755_v30 }
 0x1cb   :  { %v703_v38 = vmul.f32 0.01, %v639_v34  ;;  %v737_v41 = vmax.f32 %v647_v25, %v705_v33  ;;  %v660_v46 = vadd.f32 %v1957_v37, %v2393_v0 }
 0x1cc   :  { %v651_v42 = vpop.f32.mrf.mxu1 }
 0x1cd   :  { %v735_v40 = vmax.f32 %v639_v34, %v703_v38  ;;  %v652_v43 = vadd.f32 %v2393_v0, %v651_v42  ;;  %v757_v50 = vpack.c.bf16 %v737_v41, %v736_v45  ;;  %v708_v53 = vmul.f32 0.01, %v660_v46 }
 0x1ce   :  { %v1958_v47 = vpop.f32.mrf.mxu1 }
 0x1cf   :  { %v663_v49 = vadd.f32 %v1958_v47, %v2393_v0  ;;  %v756_v39 = vpack.c.bf16 %v735_v40, %v734_v15  ;;  %v706_v51 = vmul.f32 0.01, %v652_v43  ;;  %v740_v63 = vmax.f32 %v660_v46, %v708_v53 }
 0x1d0   :  { %v654_v48 = vpop.f32.mrf.mxu1 }
 0x1d1   :  { %v709_v52 = vmul.f32 0.01, %v663_v49  ;;  %v655_v32 = vadd.f32 %v2393_v0, %v654_v48  ;;  %1999 = vmatprep.mubr.bf16.mxu0 %v756_v39  ;;  %v738_v59 = vmax.f32 %v652_v43, %v706_v51 }
 0x1d2   :  { %v1961_v55 = vpop.f32.mrf.mxu1  ;;  %2000 = vmatmul.mubr.bf16.gmra.mxu0 %v757_v50 }
 0x1d3   :  { %v707_v56 = vmul.f32 0.01, %v655_v32  ;;  %v741_v57 = vmax.f32 %v663_v49, %v709_v52  ;;  %v676_v1 = vadd.f32 %v1961_v55, %v2393_v0 }
 0x1d4   :  { %v667_v58 = vpop.f32.mrf.mxu1 }
 0x1d5   :  { %v739_v61 = vmax.f32 %v655_v32, %v707_v56  ;;  %v668_v62 = vadd.f32 %v2393_v0, %v667_v58  ;;  %v759_v7 = vpack.c.bf16 %v741_v57, %v740_v63  ;;  %v712_v10 = vmul.f32 0.01, %v676_v1 }
 0x1d6   :  { %v1962_v3 = vpop.f32.mrf.mxu1 }
 0x1d7   :  { %v679_v4 = vadd.f32 %v1962_v3, %v2393_v0  ;;  %v758_v5 = vpack.c.bf16 %v739_v61, %v738_v59  ;;  %v710_v8 = vmul.f32 0.01, %v668_v62  ;;  %v744_v13 = vmax.f32 %v676_v1, %v712_v10 }
 0x1d8   :  { %v670_v35 = vpop.f32.mrf.mxu1 }
 0x1d9   :  { %v713_v9 = vmul.f32 0.01, %v679_v4  ;;  %v671_v44 = vadd.f32 %v2393_v0, %v670_v35  ;;  %2003 = vmatprep.mubr.bf16.mxu0 %v758_v5  ;;  %v742_v6 = vmax.f32 %v668_v62, %v710_v8  ;;  %v2153_v0 = vld [vmem:[%s2697_s3 + $0x38] sm:$0xff]  }
 0x1da   :  { %2004 = vmatmul.mubr.bf16.gmra.mxu0 %v759_v7  ;;  %2059 = vmatprep.subr.bf16.mxu0 %v2153_v0 }
 0x1db   :  { %v711_v11 = vmul.f32 0.01, %v671_v44  ;;  %v745_v60 = vmax.f32 %v679_v4, %v713_v9  ;;  %2060 = vmatpush3.bf16.msra.mxu0 %v2153_v0 }
 0x1dc   :  { %2061 = vmatprep.subr.bf16.mxu0 %v2154_v18 }
 0x1dd   :  { %v743_v12 = vmax.f32 %v671_v44, %v711_v11  ;;  %v761_v16 = vpack.c.bf16 %v745_v60, %v744_v13 }
 0x1df   :  { %v760_v14 = vpack.c.bf16 %v743_v12, %v742_v6  ;;  %2062 = vmatpush3.bf16.msra.mxu0 %v2154_v18 }
 0x1e0   :  { %2063 = vmatprep.subr.bf16.mxu0 %v2155_v19 }
 0x1e1   :  { %2007 = vmatprep.mubr.bf16.mxu0 %v760_v14 }
 0x1e2   :  { %2008 = vmatmul.mubr.bf16.gmra.mxu0 %v761_v16 }
 0x1e3   :  { %2064 = vmatpush3.bf16.msra.mxu0 %v2155_v19 }
 0x1e4   :  { %2065 = vmatprep.subr.bf16.mxu0 %v2156_v20 }
 0x1e7   :  { %2066 = vmatpush3.bf16.msra.mxu0 %v2156_v20 }
 0x1e8   :  { %2067 = vmatprep.subr.bf16.mxu0 %v2157_v21 }
 0x1eb   :  { %2068 = vmatpush3.bf16.msra.mxu0 %v2157_v21 }
 0x1ec   :  { %2069 = vmatprep.subr.bf16.mxu0 %v2158_v22 }
 0x1ef   :  { %2070 = vmatpush3.bf16.msra.mxu0 %v2158_v22 }
 0x1f0   :  { %2071 = vmatprep.subr.bf16.mxu0 %v2159_v23 }
 0x1f3   :  { %2072 = vmatpush3.bf16.msra.mxu0 %v2159_v23 }
 0x26a   :  { %v1981_v24 = vpop.f32.mrf.mxu0 }
 0x26b   :  { %v878_v27 = vadd.f32 %v1981_v24, %v2454_v54 }
 0x26c   :  { %v869_v26 = vpop.f32.mrf.mxu0 }
 0x26d   :  { %v870_v2 = vadd.f32 %v2454_v54, %v869_v26  ;;  %v998_v34 = vmul.f32 0.01, %v878_v27 }
 0x26e   :  { %v1982_v25 = vpop.f32.mrf.mxu0 }
 0x26f   :  { %v881_v28 = vadd.f32 %v1982_v25, %v2454_v54  ;;  %v996_v30 = vmul.f32 0.01, %v870_v2  ;;  %v1030_v43 = vmax.f32 %v878_v27, %v998_v34 }
 0x270   :  { %v872_v29 = vpop.f32.mrf.mxu0 }
 0x271   :  { %v999_v31 = vmul.f32 0.01, %v881_v28  ;;  %v873_v33 = vadd.f32 %v2454_v54, %v872_v29  ;;  %v1028_v42 = vmax.f32 %v870_v2, %v996_v30 }
 0x272   :  { %v1985_v36 = vpop.f32.mrf.mxu0 }
 0x273   :  { %v997_v37 = vmul.f32 0.01, %v873_v33  ;;  %v1031_v38 = vmax.f32 %v881_v28, %v999_v31  ;;  %v894_v45 = vadd.f32 %v1985_v36, %v2454_v54 }
 0x274   :  { %v885_v41 = vpop.f32.mrf.mxu0 }
 0x275   :  { %v1029_v15 = vmax.f32 %v873_v33, %v997_v37  ;;  %v886_v40 = vadd.f32 %v2454_v54, %v885_v41  ;;  %v1061_v39 = vpack.c.bf16 %v1031_v38, %v1030_v43  ;;  %v1002_v32 = vmul.f32 0.01, %v894_v45 }
 0x276   :  { %v1986_v46 = vpop.f32.mrf.mxu0 }
 0x277   :  { %v897_v47 = vadd.f32 %v1986_v46, %v2454_v54  ;;  %v1060_v49 = vpack.c.bf16 %v1029_v15, %v1028_v42  ;;  %v1000_v50 = vmul.f32 0.01, %v886_v40  ;;  %v1034_v62 = vmax.f32 %v894_v45, %v1002_v32 }
 0x278   :  { %v888_v48 = vpop.f32.mrf.mxu0 }
 0x279   :  { %v1003_v51 = vmul.f32 0.01, %v897_v47  ;;  %v889_v52 = vadd.f32 %v2454_v54, %v888_v48  ;;  %2027 = vmatprep.mubr.bf16.mxu1 %v1060_v49  ;;  %v1032_v58 = vmax.f32 %v886_v40, %v1000_v50 }
 0x27a   :  { %v1989_v53 = vpop.f32.mrf.mxu0  ;;  %2028 = vmatmul.mubr.bf16.vlgmr.msra.gmra.mxu1 %v1061_v39 }
 0x27b   :  { %v1001_v55 = vmul.f32 0.01, %v889_v52  ;;  %v1035_v56 = vmax.f32 %v897_v47, %v1003_v51  ;;  %v910_v63 = vadd.f32 %v1989_v53, %v2454_v54 }
 0x27c   :  { %v901_v57 = vpop.f32.mrf.mxu0 }
 0x27d   :  { %v1033_v59 = vmax.f32 %v889_v52, %v1001_v55  ;;  %v902_v61 = vadd.f32 %v2454_v54, %v901_v57  ;;  %v1063_v35 = vpack.c.bf16 %v1035_v56, %v1034_v62  ;;  %v1006_v44 = vmul.f32 0.01, %v910_v63 }
 0x27e   :  { %v1990_v1 = vpop.f32.mrf.mxu0 }
 0x27f   :  { %v913_v3 = vadd.f32 %v1990_v1, %v2454_v54  ;;  %v1062_v4 = vpack.c.bf16 %v1033_v59, %v1032_v58  ;;  %v1004_v7 = vmul.f32 0.01, %v902_v61  ;;  %v1038_v16 = vmax.f32 %v910_v63, %v1006_v44 }
 0x280   :  { %v904_v5 = vpop.f32.mrf.mxu0 }
 0x281   :  { %v1007_v8 = vmul.f32 0.01, %v913_v3  ;;  %v905_v9 = vadd.f32 %v2454_v54, %v904_v5  ;;  %2031 = vmatprep.mubr.bf16.mxu1 %v1062_v4  ;;  %v1036_v12 = vmax.f32 %v902_v61, %v1004_v7 }
 0x282   :  { %v1993_v10 = vpop.f32.mrf.mxu0  ;;  %2032 = vmatmul.mubr.bf16.gmra.mxu1 %v1063_v35 }
 0x283   :  { %v1005_v11 = vmul.f32 0.01, %v905_v9  ;;  %v1039_v60 = vmax.f32 %v913_v3, %v1007_v8  ;;  %v926_v17 = vadd.f32 %v1993_v10, %v2454_v54 }
 0x284   :  { %v917_v6 = vpop.f32.mrf.mxu0 }
 0x285   :  { %v1037_v13 = vmax.f32 %v905_v9, %v1005_v11  ;;  %v918_v14 = vadd.f32 %v2454_v54, %v917_v6  ;;  %v1065_v21 = vpack.c.bf16 %v1039_v60, %v1038_v16  ;;  %v1010_v26 = vmul.f32 0.01, %v926_v17 }
 0x286   :  { %v1994_v0 = vpop.f32.mrf.mxu0 }
 0x287   :  { %v929_v18 = vadd.f32 %v1994_v0, %v2454_v54  ;;  %v1064_v19 = vpack.c.bf16 %v1037_v13, %v1036_v12  ;;  %v1008_v22 = vmul.f32 0.01, %v918_v14  ;;  %v1042_v33 = vmax.f32 %v926_v17, %v1010_v26 }
 0x288   :  { %v920_v20 = vpop.f32.mrf.mxu0 }
 0x289   :  { %v1011_v23 = vmul.f32 0.01, %v929_v18  ;;  %v921_v24 = vadd.f32 %v2454_v54, %v920_v20  ;;  %2035 = vmatprep.mubr.bf16.mxu1 %v1064_v19  ;;  %v1040_v29 = vmax.f32 %v918_v14, %v1008_v22 }
 0x28a   :  { %v1997_v2 = vpop.f32.mrf.mxu0  ;;  %2036 = vmatmul.mubr.bf16.gmra.mxu1 %v1065_v21 }
 0x28b   :  { %v1009_v27 = vmul.f32 0.01, %v921_v24  ;;  %v1043_v25 = vmax.f32 %v929_v18, %v1011_v23  ;;  %v942_v34 = vadd.f32 %v1997_v2, %v2454_v54 }
 0x28c   :  { %v933_v28 = vpop.f32.mrf.mxu0 }
 0x28d   :  { %v1041_v30 = vmax.f32 %v921_v24, %v1009_v27  ;;  %v934_v31 = vadd.f32 %v2454_v54, %v933_v28  ;;  %v1067_v42 = vpack.c.bf16 %v1043_v25, %v1042_v33  ;;  %v1014_v45 = vmul.f32 0.01, %v942_v34 }
 0x28e   :  { %v1998_v36 = vpop.f32.mrf.mxu0 }
 0x28f   :  { %v945_v37 = vadd.f32 %v1998_v36, %v2454_v54  ;;  %v1066_v38 = vpack.c.bf16 %v1041_v30, %v1040_v29  ;;  %v1012_v15 = vmul.f32 0.01, %v934_v31  ;;  %v1046_v52 = vmax.f32 %v942_v34, %v1014_v45 }
 0x290   :  { %v936_v41 = vpop.f32.mrf.mxu0 }
 0x291   :  { %v1015_v40 = vmul.f32 0.01, %v945_v37  ;;  %v937_v43 = vadd.f32 %v2454_v54, %v936_v41  ;;  %2039 = vmatprep.mubr.bf16.mxu1 %v1066_v38  ;;  %v1044_v48 = vmax.f32 %v934_v31, %v1012_v15 }
 0x292   :  { %v2001_v46 = vpop.f32.mrf.mxu0  ;;  %2040 = vmatmul.mubr.bf16.gmra.mxu1 %v1067_v42 }
 0x293   :  { %v1013_v47 = vmul.f32 0.01, %v937_v43  ;;  %v1047_v49 = vmax.f32 %v945_v37, %v1015_v40  ;;  %v958_v32 = vadd.f32 %v2001_v46, %v2454_v54 }
 0x294   :  { %v949_v39 = vpop.f32.mrf.mxu0 }
 0x295   :  { %v1045_v50 = vmax.f32 %v937_v43, %v1013_v47  ;;  %v950_v51 = vadd.f32 %v2454_v54, %v949_v39  ;;  %v1069_v58 = vpack.c.bf16 %v1047_v49, %v1046_v52  ;;  %v1018_v63 = vmul.f32 0.01, %v958_v32  ;;  %v2160_v43 = vld [vmem:[%s2697_s3] sm:$0xff]  }
 0x296   :  { %v2002_v53 = vpop.f32.mrf.mxu0  ;;  %2073 = vmatprep.subr.bf16.mxu0 %v2160_v43 }
 0x297   :  { %v961_v55 = vadd.f32 %v2002_v53, %v2454_v54  ;;  %v1068_v56 = vpack.c.bf16 %v1045_v50, %v1044_v48  ;;  %v1016_v59 = vmul.f32 0.01, %v950_v51  ;;  %v1050_v9 = vmax.f32 %v958_v32, %v1018_v63  ;;  %2074 = vmatpush3.bf16.msra.mxu0 %v2160_v43 }
 0x298   :  { %v952_v57 = vpop.f32.mrf.mxu0 }
 0x299   :  { %v1019_v61 = vmul.f32 0.01, %v961_v55  ;;  %v953_v62 = vadd.f32 %v2454_v54, %v952_v57  ;;  %2043 = vmatprep.mubr.bf16.mxu1 %v1068_v56  ;;  %v1048_v35 = vmax.f32 %v950_v51, %v1016_v59 }
 0x29a   :  { %v2005_v1 = vpop.f32.mrf.mxu0  ;;  %2044 = vmatmul.mubr.bf16.gmra.mxu1 %v1069_v58 }
 0x29b   :  { %v1017_v3 = vmul.f32 0.01, %v953_v62  ;;  %v1051_v4 = vmax.f32 %v961_v55, %v1019_v61  ;;  %v974_v44 = vadd.f32 %v2005_v1, %v2454_v54 }
 0x29c   :  { %v965_v5 = vpop.f32.mrf.mxu0 }
 0x29d   :  { %v1049_v7 = vmax.f32 %v953_v62, %v1017_v3  ;;  %v966_v8 = vadd.f32 %v2454_v54, %v965_v5  ;;  %v1071_v12 = vpack.c.bf16 %v1051_v4, %v1050_v9  ;;  %v1022_v17 = vmul.f32 0.01, %v974_v44 }
 0x29e   :  { %v2006_v10 = vpop.f32.mrf.mxu0 }
 0x29f   :  { %v977_v11 = vadd.f32 %v2006_v10, %v2454_v54  ;;  %v1070_v60 = vpack.c.bf16 %v1049_v7, %v1048_v35  ;;  %v1020_v13 = vmul.f32 0.01, %v966_v8  ;;  %v1054_v24 = vmax.f32 %v974_v44, %v1022_v17 }
 0x2a0   :  { %v968_v6 = vpop.f32.mrf.mxu0 }
 0x2a1   :  { %v1023_v14 = vmul.f32 0.01, %v977_v11  ;;  %v969_v16 = vadd.f32 %v2454_v54, %v968_v6  ;;  %2047 = vmatprep.mubr.bf16.mxu1 %v1070_v60  ;;  %v1052_v21 = vmax.f32 %v966_v8, %v1020_v13 }
 0x2a2   :  { %v2009_v0 = vpop.f32.mrf.mxu0  ;;  %2048 = vmatmul.mubr.bf16.gmra.mxu1 %v1071_v12 }
 0x2a3   :  { %v1021_v18 = vmul.f32 0.01, %v969_v16  ;;  %v1055_v19 = vmax.f32 %v977_v11, %v1023_v14  ;;  %v990_v26 = vadd.f32 %v2009_v0, %v2454_v54 }
 0x2a4   :  { %v981_v20 = vpop.f32.mrf.mxu0 }
 0x2a5   :  { %v1053_v22 = vmax.f32 %v969_v16, %v1021_v18  ;;  %v982_v23 = vadd.f32 %v2454_v54, %v981_v20  ;;  %v1073_v29 = vpack.c.bf16 %v1055_v19, %v1054_v24  ;;  %v1026_v34 = vmul.f32 0.01, %v990_v26 }
 0x2a6   :  { %v2010_v2 = vpop.f32.mrf.mxu0 }
 0x2a7   :  { %v993_v27 = vadd.f32 %v2010_v2, %v2454_v54  ;;  %v1072_v25 = vpack.c.bf16 %v1053_v22, %v1052_v21  ;;  %v1024_v30 = vmul.f32 0.01, %v982_v23  ;;  %v1058_v42 = vmax.f32 %v990_v26, %v1026_v34 }
 0x2a8   :  { %v984_v28 = vpop.f32.mrf.mxu0 }
 0x2a9   :  { %v1027_v31 = vmul.f32 0.01, %v993_v27  ;;  %v985_v33 = vadd.f32 %v2454_v54, %v984_v28  ;;  %2051 = vmatprep.mubr.bf16.mxu1 %v1072_v25  ;;  %v1056_v38 = vmax.f32 %v982_v23, %v1024_v30  ;;  %v2494_v54 = vld [vmem:[%s2696_s4 + $0x3] ss:$0 sm:$0xff] }
 0x2aa   :  { %2052 = vmatmul.mubr.bf16.gmra.mxu1 %v1073_v29 }
 0x2ab   :  { %v1025_v36 = vmul.f32 0.01, %v985_v33  ;;  %v1059_v37 = vmax.f32 %v993_v27, %v1027_v31 }
 0x2ad   :  { %v1057_v41 = vmax.f32 %v985_v33, %v1025_v36  ;;  %v1075_v40 = vpack.c.bf16 %v1059_v37, %v1058_v42 }
 0x2af   :  { %v1074_v15 = vpack.c.bf16 %v1057_v41, %v1056_v38 }
 0x2b1   :  { %2055 = vmatprep.mubr.bf16.mxu1 %v1074_v15 }
 0x2b2   :  { %2056 = vmatmul.mubr.bf16.gmra.mxu1 %v1075_v40 }
 0x33a   :  { %v2029_v45 = vpop.f32.mrf.mxu1 }
 0x33b   :  { %v1192_v49 = vadd.f32 %v2029_v45, %v2494_v54 }
 0x33c   :  { %v1183_v46 = vpop.f32.mrf.mxu1 }
 0x33d   :  { %v1184_v47 = vadd.f32 %v2494_v54, %v1183_v46  ;;  %v1312_v53 = vmul.f32 0.01, %v1192_v49 }
 0x33e   :  { %v2030_v39 = vpop.f32.mrf.mxu1 }
 0x33f   :  { %v1195_v48 = vadd.f32 %v2030_v39, %v2494_v54  ;;  %v1310_v51 = vmul.f32 0.01, %v1184_v47  ;;  %v1344_v63 = vmax.f32 %v1192_v49, %v1312_v53 }
 0x340   :  { %v1186_v50 = vpop.f32.mrf.mxu1 }
 0x341   :  { %v1313_v52 = vmul.f32 0.01, %v1195_v48  ;;  %v1187_v32 = vadd.f32 %v2494_v54, %v1186_v50  ;;  %v1342_v59 = vmax.f32 %v1184_v47, %v1310_v51 }
 0x342   :  { %v2033_v55 = vpop.f32.mrf.mxu1 }
 0x343   :  { %v1311_v56 = vmul.f32 0.01, %v1187_v32  ;;  %v1345_v57 = vmax.f32 %v1195_v48, %v1313_v52  ;;  %v1208_v1 = vadd.f32 %v2033_v55, %v2494_v54 }
 0x344   :  { %v1199_v58 = vpop.f32.mrf.mxu1 }
 0x345   :  { %v1343_v61 = vmax.f32 %v1187_v32, %v1311_v56  ;;  %v1200_v62 = vadd.f32 %v2494_v54, %v1199_v58  ;;  %v1375_v35 = vpack.c.bf16 %v1345_v57, %v1344_v63  ;;  %v1316_v10 = vmul.f32 0.01, %v1208_v1 }
 0x346   :  { %v2034_v3 = vpop.f32.mrf.mxu1 }
 0x347   :  { %v1211_v4 = vadd.f32 %v2034_v3, %v2494_v54  ;;  %v1374_v5 = vpack.c.bf16 %v1343_v61, %v1342_v59  ;;  %v1314_v8 = vmul.f32 0.01, %v1200_v62  ;;  %v1348_v17 = vmax.f32 %v1208_v1, %v1316_v10 }
 0x348   :  { %v1202_v7 = vpop.f32.mrf.mxu1 }
 0x349   :  { %v1317_v9 = vmul.f32 0.01, %v1211_v4  ;;  %v1203_v44 = vadd.f32 %v2494_v54, %v1202_v7  ;;  %2075 = vmatprep.mubr.bf16.mxu0 %v1374_v5  ;;  %v1346_v13 = vmax.f32 %v1200_v62, %v1314_v8 }
 0x34a   :  { %v2037_v11 = vpop.f32.mrf.mxu1  ;;  %2076 = vmatmul.mubr.bf16.vlgmr.msra.gmra.mxu0 %v1375_v35 }
 0x34b   :  { %v1315_v60 = vmul.f32 0.01, %v1203_v44  ;;  %v1349_v6 = vmax.f32 %v1211_v4, %v1317_v9  ;;  %v1224_v0 = vadd.f32 %v2037_v11, %v2494_v54 }
 0x34c   :  { %v1215_v12 = vpop.f32.mrf.mxu1 }
 0x34d   :  { %v1347_v14 = vmax.f32 %v1203_v44, %v1315_v60  ;;  %v1216_v16 = vadd.f32 %v2494_v54, %v1215_v12  ;;  %v1377_v22 = vpack.c.bf16 %v1349_v6, %v1348_v17  ;;  %v1320_v2 = vmul.f32 0.01, %v1224_v0 }
 0x34e   :  { %v2038_v18 = vpop.f32.mrf.mxu1 }
 0x34f   :  { %v1227_v19 = vadd.f32 %v2038_v18, %v2494_v54  ;;  %v1376_v20 = vpack.c.bf16 %v1347_v14, %v1346_v13  ;;  %v1318_v23 = vmul.f32 0.01, %v1216_v16  ;;  %v1352_v34 = vmax.f32 %v1224_v0, %v1320_v2 }
 0x350   :  { %v1218_v21 = vpop.f32.mrf.mxu1 }
 0x351   :  { %v1321_v24 = vmul.f32 0.01, %v1227_v19  ;;  %v1219_v26 = vadd.f32 %v2494_v54, %v1218_v21  ;;  %2079 = vmatprep.mubr.bf16.mxu0 %v1376_v20  ;;  %v1350_v30 = vmax.f32 %v1216_v16, %v1318_v23 }
 0x352   :  { %v2041_v27 = vpop.f32.mrf.mxu1  ;;  %2080 = vmatmul.mubr.bf16.gmra.mxu0 %v1377_v22 }
 0x353   :  { %v1319_v25 = vmul.f32 0.01, %v1219_v26  ;;  %v1353_v28 = vmax.f32 %v1227_v19, %v1321_v24  ;;  %v1240_v36 = vadd.f32 %v2041_v27, %v2494_v54 }
 0x354   :  { %v1231_v29 = vpop.f32.mrf.mxu1 }
 0x355   :  { %v1351_v31 = vmax.f32 %v1219_v26, %v1319_v25  ;;  %v1232_v33 = vadd.f32 %v2494_v54, %v1231_v29  ;;  %v1379_v15 = vpack.c.bf16 %v1353_v28, %v1352_v34  ;;  %v1324_v46 = vmul.f32 0.01, %v1240_v36 }
 0x356   :  { %v2042_v37 = vpop.f32.mrf.mxu1 }
 0x357   :  { %v1243_v38 = vadd.f32 %v2042_v37, %v2494_v54  ;;  %v1378_v41 = vpack.c.bf16 %v1351_v31, %v1350_v30  ;;  %v1322_v40 = vmul.f32 0.01, %v1232_v33  ;;  %v1356_v32 = vmax.f32 %v1240_v36, %v1324_v46 }
 0x358   :  { %v1234_v42 = vpop.f32.mrf.mxu1 }
 0x359   :  { %v1325_v43 = vmul.f32 0.01, %v1243_v38  ;;  %v1235_v45 = vadd.f32 %v2494_v54, %v1234_v42  ;;  %2083 = vmatprep.mubr.bf16.mxu0 %v1378_v41  ;;  %v1354_v50 = vmax.f32 %v1232_v33, %v1322_v40 }
 0x35a   :  { %v2045_v47 = vpop.f32.mrf.mxu1  ;;  %2084 = vmatmul.mubr.bf16.gmra.mxu0 %v1379_v15 }
 0x35b   :  { %v1323_v49 = vmul.f32 0.01, %v1235_v45  ;;  %v1357_v39 = vmax.f32 %v1243_v38, %v1325_v43  ;;  %v1256_v53 = vadd.f32 %v2045_v47, %v2494_v54 }
 0x35c   :  { %v1247_v48 = vpop.f32.mrf.mxu1 }
 0x35d   :  { %v1355_v51 = vmax.f32 %v1235_v45, %v1323_v49  ;;  %v1248_v52 = vadd.f32 %v2494_v54, %v1247_v48  ;;  %v1381_v59 = vpack.c.bf16 %v1357_v39, %v1356_v32  ;;  %v1328_v1 = vmul.f32 0.01, %v1256_v53 }
 0x35e   :  { %v2046_v55 = vpop.f32.mrf.mxu1 }
 0x35f   :  { %v1259_v56 = vadd.f32 %v2046_v55, %v2494_v54  ;;  %v1380_v57 = vpack.c.bf16 %v1355_v51, %v1354_v50  ;;  %v1326_v61 = vmul.f32 0.01, %v1248_v52  ;;  %v1360_v44 = vmax.f32 %v1256_v53, %v1328_v1 }
 0x360   :  { %v1250_v58 = vpop.f32.mrf.mxu1 }
 0x361   :  { %v1329_v62 = vmul.f32 0.01, %v1259_v56  ;;  %v1251_v63 = vadd.f32 %v2494_v54, %v1250_v58  ;;  %2087 = vmatprep.mubr.bf16.mxu0 %v1380_v57  ;;  %v1358_v7 = vmax.f32 %v1248_v52, %v1326_v61 }
 0x362   :  { %v2049_v3 = vpop.f32.mrf.mxu1  ;;  %2088 = vmatmul.mubr.bf16.gmra.mxu0 %v1381_v59 }
 0x363   :  { %v1327_v4 = vmul.f32 0.01, %v1251_v63  ;;  %v1361_v5 = vmax.f32 %v1259_v56, %v1329_v62  ;;  %v1272_v10 = vadd.f32 %v2049_v3, %v2494_v54 }
 0x364   :  { %v1263_v35 = vpop.f32.mrf.mxu1 }
 0x365   :  { %v1359_v8 = vmax.f32 %v1251_v63, %v1327_v4  ;;  %v1264_v9 = vadd.f32 %v2494_v54, %v1263_v35  ;;  %v1383_v13 = vpack.c.bf16 %v1361_v5, %v1360_v44  ;;  %v1332_v0 = vmul.f32 0.01, %v1272_v10  ;;  %v2531_v63 = vld [vmem:[%s2698_s5] ss:$0 sm:$0xff] }
 0x366   :  { %v2050_v11 = vpop.f32.mrf.mxu1 }
 0x367   :  { %v1275_v60 = vadd.f32 %v2050_v11, %v2494_v54  ;;  %v1382_v6 = vpack.c.bf16 %v1359_v8, %v1358_v7  ;;  %v1330_v14 = vmul.f32 0.01, %v1264_v9  ;;  %v1364_v26 = vmax.f32 %v1272_v10, %v1332_v0 }
 0x368   :  { %v1266_v12 = vpop.f32.mrf.mxu1 }
 0x369   :  { %v1333_v16 = vmul.f32 0.01, %v1275_v60  ;;  %v1267_v17 = vadd.f32 %v2494_v54, %v1266_v12  ;;  %2091 = vmatprep.mubr.bf16.mxu0 %v1382_v6  ;;  %v1362_v22 = vmax.f32 %v1264_v9, %v1330_v14 }
 0x36a   :  { %v2053_v18 = vpop.f32.mrf.mxu1  ;;  %2092 = vmatmul.mubr.bf16.gmra.mxu0 %v1383_v13 }
 0x36b   :  { %v1331_v19 = vmul.f32 0.01, %v1267_v17  ;;  %v1365_v20 = vmax.f32 %v1275_v60, %v1333_v16  ;;  %v1288_v2 = vadd.f32 %v2053_v18, %v2494_v54 }
 0x36c   :  { %v1279_v21 = vpop.f32.mrf.mxu1 }
 0x36d   :  { %v1363_v23 = vmax.f32 %v1267_v17, %v1331_v19  ;;  %v1280_v24 = vadd.f32 %v2494_v54, %v1279_v21  ;;  %v1385_v30 = vpack.c.bf16 %v1365_v20, %v1364_v26  ;;  %v1336_v36 = vmul.f32 0.01, %v1288_v2 }
 0x36e   :  { %v2054_v27 = vpop.f32.mrf.mxu1 }
 0x36f   :  { %v1291_v25 = vadd.f32 %v2054_v27, %v2494_v54  ;;  %v1384_v28 = vpack.c.bf16 %v1363_v23, %v1362_v22  ;;  %v1334_v31 = vmul.f32 0.01, %v1280_v24  ;;  %v1368_v45 = vmax.f32 %v1288_v2, %v1336_v36 }
 0x370   :  { %v1282_v29 = vpop.f32.mrf.mxu1 }
 0x371   :  { %v1337_v33 = vmul.f32 0.01, %v1291_v25  ;;  %v1283_v34 = vadd.f32 %v2494_v54, %v1282_v29  ;;  %2095 = vmatprep.mubr.bf16.mxu0 %v1384_v28  ;;  %v1366_v15 = vmax.f32 %v1280_v24, %v1334_v31 }
 0x372   :  { %v2057_v37 = vpop.f32.mrf.mxu1  ;;  %2096 = vmatmul.mubr.bf16.gmra.mxu0 %v1385_v30 }
 0x373   :  { %v1335_v38 = vmul.f32 0.01, %v1283_v34  ;;  %v1369_v41 = vmax.f32 %v1291_v25, %v1337_v33  ;;  %v1304_v46 = vadd.f32 %v2057_v37, %v2494_v54 }
 0x374   :  { %v1295_v42 = vpop.f32.mrf.mxu1 }
 0x375   :  { %v1367_v40 = vmax.f32 %v1283_v34, %v1335_v38  ;;  %v1296_v43 = vadd.f32 %v2494_v54, %v1295_v42  ;;  %v1387_v50 = vpack.c.bf16 %v1369_v41, %v1368_v45  ;;  %v1340_v53 = vmul.f32 0.01, %v1304_v46 }
 0x376   :  { %v2058_v47 = vpop.f32.mrf.mxu1 }
 0x377   :  { %v1307_v49 = vadd.f32 %v2058_v47, %v2494_v54  ;;  %v1386_v39 = vpack.c.bf16 %v1367_v40, %v1366_v15  ;;  %v1338_v51 = vmul.f32 0.01, %v1296_v43  ;;  %v1372_v59 = vmax.f32 %v1304_v46, %v1340_v53 }
 0x378   :  { %v1298_v48 = vpop.f32.mrf.mxu1 }
 0x379   :  { %v1341_v52 = vmul.f32 0.01, %v1307_v49  ;;  %v1299_v32 = vadd.f32 %v2494_v54, %v1298_v48  ;;  %2099 = vmatprep.mubr.bf16.mxu0 %v1386_v39  ;;  %v1370_v57 = vmax.f32 %v1296_v43, %v1338_v51 }
 0x37a   :  { %2100 = vmatmul.mubr.bf16.gmra.mxu0 %v1387_v50 }
 0x37b   :  { %v1339_v55 = vmul.f32 0.01, %v1299_v32  ;;  %v1373_v56 = vmax.f32 %v1307_v49, %v1341_v52 }
 0x37d   :  { %v1371_v58 = vmax.f32 %v1299_v32, %v1339_v55  ;;  %v1389_v62 = vpack.c.bf16 %v1373_v56, %v1372_v59 }
 0x37f   :  { %v1388_v61 = vpack.c.bf16 %v1371_v58, %v1370_v57 }
 0x381   :  { %2103 = vmatprep.mubr.bf16.mxu0 %v1388_v61 }
 0x382   :  { %2104 = vmatmul.mubr.bf16.gmra.mxu0 %v1389_v62 }
 0x40a   :  { %v2077_v1 = vpop.f32.mrf.mxu0 }
 0x40b   :  { %v1504_v54 = vadd.f32 %v2077_v1, %v2531_v63 }
 0x40c   :  { %v1495_v3 = vpop.f32.mrf.mxu0 }
 0x40d   :  { %1625 = vst.msk [vmem:[%s2699_s6 + $0x10] sm:$0xff] %vm1622_vm1, %v1504_v54  ;;  %v1496_v4 = vadd.f32 %v2531_v63, %v1495_v3 }
 0x40e   :  { %v2078_v5 = vpop.f32.mrf.mxu0 }
 0x40f   :  { %1623 = vst.msk [vmem:[%s2699_s6] sm:$0xff] %vm1622_vm1, %v1496_v4  ;;  %v1507_v35 = vadd.f32 %v2078_v5, %v2531_v63 }
 0x410   :  { %v1498_v7 = vpop.f32.mrf.mxu0 }
 0x411   :  { %1626 = vst.msk [vmem:[%s2699_s6 + $0x18] sm:$0xff] %vm1622_vm1, %v1507_v35  ;;  %v1499_v8 = vadd.f32 %v2531_v63, %v1498_v7 }
 0x412   :  { %v2081_v9 = vpop.f32.mrf.mxu0 }
 0x413   :  { %1624 = vst.msk [vmem:[%s2699_s6 + $0x8] sm:$0xff] %vm1622_vm1, %v1499_v8  ;;  %v1520_v44 = vadd.f32 %v2081_v9, %v2531_v63 }
 0x414   :  { %v1511_v10 = vpop.f32.mrf.mxu0 }
 0x415   :  { %1629 = vst.msk [vmem:[%s2699_s6 + $0x30] sm:$0xff] %vm1622_vm1, %v1520_v44  ;;  %v1512_v11 = vadd.f32 %v2531_v63, %v1511_v10 }
 0x416   :  { %v2082_v60 = vpop.f32.mrf.mxu0 }
 0x417   :  { %1627 = vst.msk [vmem:[%s2699_s6 + $0x20] sm:$0xff] %vm1622_vm1, %v1512_v11  ;;  %v1523_v6 = vadd.f32 %v2082_v60, %v2531_v63 }
 0x418   :  { %v1514_v12 = vpop.f32.mrf.mxu0 }
 0x419   :  { %1630 = vst.msk [vmem:[%s2699_s6 + $0x38] sm:$0xff] %vm1622_vm1, %v1523_v6  ;;  %v1515_v13 = vadd.f32 %v2531_v63, %v1514_v12 }
 0x41a   :  { %v2085_v14 = vpop.f32.mrf.mxu0 }
 0x41b   :  { %1628 = vst.msk [vmem:[%s2699_s6 + $0x28] sm:$0xff] %vm1622_vm1, %v1515_v13  ;;  %v1536_v16 = vadd.f32 %v2085_v14, %v2531_v63 }
 0x41c   :  { %v1527_v17 = vpop.f32.mrf.mxu0 }
 0x41d   :  { %1633 = vst.msk [vmem:[%s2699_s6 + $0x50] sm:$0xff] %vm1622_vm1, %v1536_v16  ;;  %v1528_v0 = vadd.f32 %v2531_v63, %v1527_v17 }
 0x41e   :  { %v2086_v18 = vpop.f32.mrf.mxu0 }
 0x41f   :  { %1631 = vst.msk [vmem:[%s2699_s6 + $0x40] sm:$0xff] %vm1622_vm1, %v1528_v0  ;;  %v1539_v19 = vadd.f32 %v2086_v18, %v2531_v63 }
 0x420   :  { %v1530_v20 = vpop.f32.mrf.mxu0 }
 0x421   :  { %1634 = vst.msk [vmem:[%s2699_s6 + $0x58] sm:$0xff] %vm1622_vm1, %v1539_v19  ;;  %v1531_v21 = vadd.f32 %v2531_v63, %v1530_v20 }
 0x422   :  { %v2089_v22 = vpop.f32.mrf.mxu0 }
 0x423   :  { %1632 = vst.msk [vmem:[%s2699_s6 + $0x48] sm:$0xff] %vm1622_vm1, %v1531_v21  ;;  %v1552_v23 = vadd.f32 %v2089_v22, %v2531_v63 }
 0x424   :  { %v1543_v24 = vpop.f32.mrf.mxu0 }
 0x425   :  { %1637 = vst.msk [vmem:[%s2699_s6 + $0x70] sm:$0xff] %vm1622_vm1, %v1552_v23  ;;  %v1544_v26 = vadd.f32 %v2531_v63, %v1543_v24 }
 0x426   :  { %v2090_v2 = vpop.f32.mrf.mxu0 }
 0x427   :  { %1635 = vst.msk [vmem:[%s2699_s6 + $0x60] sm:$0xff] %vm1622_vm1, %v1544_v26  ;;  %v1555_v27 = vadd.f32 %v2090_v2, %v2531_v63 }
 0x428   :  { %v1546_v25 = vpop.f32.mrf.mxu0 }
 0x429   :  { %1638 = vst.msk [vmem:[%s2699_s6 + $0x78] sm:$0xff] %vm1622_vm1, %v1555_v27  ;;  %v1547_v28 = vadd.f32 %v2531_v63, %v1546_v25 }
 0x42a   :  { %v2093_v29 = vpop.f32.mrf.mxu0 }
 0x42b   :  { %1636 = vst.msk [vmem:[%s2699_s6 + $0x68] sm:$0xff] %vm1622_vm1, %v1547_v28  ;;  %v1568_v30 = vadd.f32 %v2093_v29, %v2531_v63 }
 0x42c   :  { %v1559_v31 = vpop.f32.mrf.mxu0 }
 0x42d   :  { %1641 = vst.msk [vmem:[%s2699_s6 + $0x90] sm:$0xff] %vm1622_vm1, %v1568_v30  ;;  %v1560_v33 = vadd.f32 %v2531_v63, %v1559_v31 }
 0x42e   :  { %v2094_v34 = vpop.f32.mrf.mxu0 }
 0x42f   :  { %1639 = vst.msk [vmem:[%s2699_s6 + $0x80] sm:$0xff] %vm1622_vm1, %v1560_v33  ;;  %v1571_v36 = vadd.f32 %v2094_v34, %v2531_v63 }
 0x430   :  { %v1562_v37 = vpop.f32.mrf.mxu0 }
 0x431   :  { %1642 = vst.msk [vmem:[%s2699_s6 + $0x98] sm:$0xff] %vm1622_vm1, %v1571_v36  ;;  %v1563_v38 = vadd.f32 %v2531_v63, %v1562_v37 }
 0x432   :  { %v2097_v41 = vpop.f32.mrf.mxu0 }
 0x433   :  { %1640 = vst.msk [vmem:[%s2699_s6 + $0x88] sm:$0xff] %vm1622_vm1, %v1563_v38  ;;  %v1584_v42 = vadd.f32 %v2097_v41, %v2531_v63 }
 0x434   :  { %v1575_v15 = vpop.f32.mrf.mxu0 }
 0x435   :  { %1645 = vst.msk [vmem:[%s2699_s6 + $0xb0] sm:$0xff] %vm1622_vm1, %v1584_v42  ;;  %v1576_v40 = vadd.f32 %v2531_v63, %v1575_v15 }
 0x436   :  { %v2098_v43 = vpop.f32.mrf.mxu0 }
 0x437   :  { %1643 = vst.msk [vmem:[%s2699_s6 + $0xa0] sm:$0xff] %vm1622_vm1, %v1576_v40  ;;  %v1587_v45 = vadd.f32 %v2098_v43, %v2531_v63 }
 0x438   :  { %v1578_v46 = vpop.f32.mrf.mxu0 }
 0x439   :  { %1646 = vst.msk [vmem:[%s2699_s6 + $0xb8] sm:$0xff] %vm1622_vm1, %v1587_v45  ;;  %v1579_v47 = vadd.f32 %v2531_v63, %v1578_v46 }
 0x43a   :  { %v2101_v49 = vpop.f32.mrf.mxu0 }
 0x43b   :  { %1644 = vst.msk [vmem:[%s2699_s6 + $0xa8] sm:$0xff] %vm1622_vm1, %v1579_v47  ;;  %v1600_v39 = vadd.f32 %v2101_v49, %v2531_v63 }
 0x43c   :  { %v1591_v48 = vpop.f32.mrf.mxu0 }
 0x43d   :  { %1649 = vst.msk [vmem:[%s2699_s6 + $0xd0] sm:$0xff] %vm1622_vm1, %v1600_v39  ;;  %v1592_v50 = vadd.f32 %v2531_v63, %v1591_v48 }
 0x43e   :  { %v2102_v51 = vpop.f32.mrf.mxu0 }
 0x43f   :  { %1647 = vst.msk [vmem:[%s2699_s6 + $0xc0] sm:$0xff] %vm1622_vm1, %v1592_v50  ;;  %v1603_v52 = vadd.f32 %v2102_v51, %v2531_v63 }
 0x440   :  { %v1594_v32 = vpop.f32.mrf.mxu0 }
 0x441   :  { %1650 = vst.msk [vmem:[%s2699_s6 + $0xd8] sm:$0xff] %vm1622_vm1, %v1603_v52  ;;  %v1595_v53 = vadd.f32 %v2531_v63, %v1594_v32 }
 0x442   :  { %v2105_v55 = vpop.f32.mrf.mxu0 }
 0x443   :  { %1648 = vst.msk [vmem:[%s2699_s6 + $0xc8] sm:$0xff] %vm1622_vm1, %v1595_v53  ;;  %v1616_v56 = vadd.f32 %v2105_v55, %v2531_v63 }
 0x444   :  { %v1607_v57 = vpop.f32.mrf.mxu0 }
 0x445   :  { %1653 = vst.msk [vmem:[%s2699_s6 + $0xf0] sm:$0xff] %vm1622_vm1, %v1616_v56  ;;  %v1608_v58 = vadd.f32 %v2531_v63, %v1607_v57 }
 0x446   :  { %v2106_v59 = vpop.f32.mrf.mxu0 }
 0x447   :  { %1651 = vst.msk [vmem:[%s2699_s6 + $0xe0] sm:$0xff] %vm1622_vm1, %v1608_v58  ;;  %v1619_v61 = vadd.f32 %v2106_v59, %v2531_v63 }
 0x448   :  { %v1610_v62 = vpop.f32.mrf.mxu0 }
 0x449   :  { %1654 = vst.msk [vmem:[%s2699_s6 + $0xf8] sm:$0xff] %vm1622_vm1, %v1619_v61  ;;  %v1611_v1 = vadd.f32 %v2531_v63, %v1610_v62 }
 0x44b   :  { %1652 = vst.msk [vmem:[%s2699_s6 + $0xe8] sm:$0xff] %vm1622_vm1, %v1611_v1 }

</bundles_post_ra>
